<compile_context>
chip_gen: v5e
topology: v5e:2x2
jax: 0.10.0
libtpu: 0.0.40
codegen_flags: <defaults>
</compile_context>

<pallas_src>
import jax
import jax.numpy as jnp
from jax.experimental import pallas as pl
from jax.experimental.pallas import tpu as pltpu

# ----------------------------------------------------------------------------
# Hyper-parameters (mirror LSTMModel.__init__).  input_dim is forced to 2 by the
# reshape(x.size(0), -1, 2) in forward().
# ----------------------------------------------------------------------------
INPUT_DIM = 2
HIDDEN_DIM = 32
NUM_LAYERS = 2          # wavefront kernel below is specialized to exactly 2 layers
OUTPUT_DIM = 8
POOL_K = 2
OUT_W = (OUTPUT_DIM // POOL_K) * POOL_K   # width after fc + repeat_interleave


# ----------------------------------------------------------------------------
# Fused kernel: maxpool + wavefront 2-layer LSTM + FC (+ folded repeat).
# ----------------------------------------------------------------------------
def _make_fused_kernel(T, B, K, H, out_w):
    H2 = 2 * H            # [layer0 | layer1] state slab width
    G = 8 * H             # joint gate width (4 gates x 2 layers)

    def kernel(xw_ref, w_ref, pv_ref, out_ref):
        # ---- MaxPool1d: window is the trailing K columns of each feature half -----
        xw = xw_ref[...]                                         # (T*B, 2K) f32, t-major
        s0 = jnp.max(xw[:, :K], axis=1, keepdims=True)           # (T*B, 1) seq feature 0
        s1 = jnp.max(xw[:, K:], axis=1, keepdims=True)           # (T*B, 1) seq feature 1

        # ---- loop-invariant packed params ------------------------------------------
        w_all = w_ref[...]                                        # (2H, G+128) bf16
        w_rec = w_all[:, :G]                                      # fused block weight (2H, 8H)
        w_fc = w_all[:, G:G + out_w]                              # fc (+repeat folded)
        pv = pv_ref[...]                                          # (5, G) f32
        w0a = pv[0:1, :]                                          # input row 0, joint layout
        w0b = pv[1:2, :]                                          # input row 1, joint layout
        bias = pv[2:3, :]                                         # [b0|b1] joint, pre-scaled
        bias0 = pv[3:4, :]                                        # like bias, layer-1 lanes zeroed
        fcb = pv[4:5, :out_w]                                     # fc bias (+repeat folded)

        # ---- hoisted layer-0 input projection for ALL time steps (off critical path)
        # add_all[t*B+b, :] = x_{b,t} @ W_ih0 + (b0|b1) in joint-gate column order.
        add_all = s0 * w0a + s1 * w0b + bias                      # (T*B, G) f32

        def joint_cell(g, cc):
            # Both layers' LSTM cells fused on [·0|·1] lane slabs.  Gate columns of g
            # are [i0 i1 | f0 f1 | o0 o1 | g0 g1].  sigmoid(x) = 0.5*tanh(0.5x)+0.5;
            # the 0.5 pre-scale is folded into the packed weights, so ONE tanh pass
            # covers all eight gate blocks.
            t = jnp.tanh(g)                                       # (B, 8H) single EUP pass
            i_b = t[:, 0 * H2:1 * H2] * 0.5 + 0.5
            f_b = t[:, 1 * H2:2 * H2] * 0.5 + 0.5
            o_b = t[:, 2 * H2:3 * H2] * 0.5 + 0.5
            g_b = t[:, 3 * H2:4 * H2]
            cc = f_b * cc + i_b * g_b                             # [c0 | c1]
            hh = o_b * jnp.tanh(cc)                               # [h0 | h1]
            return hh, cc

        # ---- wavefront step 0: state is zero -> the recurrent matmul is identically 0.
        # bias0's zeroed layer-1 lanes make the layer-1 half a no-op (h1 = c1 = 0 exactly).
        g0 = s0[0:B, :] * w0a + s1[0:B, :] * w0b + bias0          # (B, G)
        hh, cc = joint_cell(g0, jnp.zeros((B, H2), jnp.float32))

        # ---- wavefront steps 1..T: ONE fused (B,2H)@(2H,8H) bf16 matmul per step ----
        # step k produces layer-0 @ t=k (k<T) and layer-1 @ t=k-1; hh/cc feed the next
        # step directly.  T is static -> fully unrolled, single basic block.
        for k in range(1, T + 1):
            z = jnp.dot(hh.astype(jnp.bfloat16), w_rec,
                        preferred_element_type=jnp.float32)       # (B, 8H)
            add = add_all[k * B:(k + 1) * B, :] if k < T else bias
            hh, cc = joint_cell(z + add, cc)

        # ---- FC + repeat_interleave (both folded into w_fc / fcb at pack time).
        # w_fc rows 0:H are zero, so the unused h0 half of hh is ignored.
        out_ref[...] = jnp.dot(hh.astype(jnp.bfloat16), w_fc,
                               preferred_element_type=jnp.float32) + fcb

    return kernel


def lstm_model_forward(x, params):
    """x: PyTorch-style (B, C, W) input.  Mirrors LSTMModel.forward exactly."""
    B = x.shape[0]
    feat = x.size // B
    assert feat % 2 == 0, "forward() reshapes to (B, 2, -1)"
    half = feat // 2
    Lp = half // POOL_K                     # MaxPool1d output width (floor-truncated)
    T = Lp                                  # LSTM sequence length (input_dim == 2)
    assert T >= 1

    # Build the exact MaxPool1d windows torch sees: reshape(B,2,-1) -> truncate to a
    # multiple of POOL_K -> window j = ch*Lp + p covers x_resh[:, ch, p*K:(p+1)*K].
    # Window j feeds seq[:, j//2, j%2]; rows are laid out t-major so the kernel's
    # per-step slice of the hoisted input projection is a contiguous 2-row block.
    xw = x.reshape(B, 2, half)[:, :, :Lp * POOL_K].reshape(B, 2 * Lp, POOL_K)
    xe = xw[:, 0::2, :]                     # windows for seq feature 0, (B, T, K)
    xo = xw[:, 1::2, :]                     # windows for seq feature 1, (B, T, K)
    xtb = jnp.stack([xe, xo], axis=2)       # (B, T, 2, K)
    xtb = jnp.transpose(xtb, (1, 0, 2, 3)).reshape(T * B, 2 * POOL_K)

    kernel = _make_fused_kernel(T, B, POOL_K, HIDDEN_DIM, OUT_W)
    return pl.pallas_call(
        kernel,
        out_shape=jax.ShapeDtypeStruct((B, OUT_W), jnp.float32),
        in_specs=[pl.BlockSpec(memory_space=pltpu.MemorySpace.VMEM)] * 3,
        out_specs=pl.BlockSpec(memory_space=pltpu.MemorySpace.VMEM),
    )(xtb, params["w_all"], params["pvec"])


# ----------------------------------------------------------------------------
# Parameter handling: raw PyTorch-layout weights -> packed wavefront weights.
# ----------------------------------------------------------------------------
def init_raw_params(key):
    """Same shapes / init range as nn.LSTM + nn.Linear (PyTorch gate order i,f,g,o)."""
    H = HIDDEN_DIM
    fc_out = OUTPUT_DIM // POOL_K
    scale = 1.0 / jnp.sqrt(H)
    keys = jax.random.split(key, 4 * NUM_LAYERS + 2)
    lstm, ki = [], 0
    for l in range(NUM_LAYERS):
        in_dim = INPUT_DIM if l == 0 else H
        w_ih = jax.random.uniform(keys[ki], (4 * H, in_dim), jnp.float32, -scale, scale); ki += 1
        w_hh = jax.random.uniform(keys[ki], (4 * H, H), jnp.float32, -scale, scale); ki += 1
        b_ih = jax.random.uniform(keys[ki], (4 * H,), jnp.float32, -scale, scale); ki += 1
        b_hh = jax.random.uniform(keys[ki], (4 * H,), jnp.float32, -scale, scale); ki += 1
        lstm.append((w_ih, w_hh, b_ih, b_hh))
    fc_w = jax.random.uniform(keys[ki], (fc_out, H), jnp.float32, -scale, scale); ki += 1
    fc_b = jax.random.uniform(keys[ki], (fc_out,), jnp.float32, -scale, scale)
    return dict(lstm=lstm, fc_w=fc_w, fc_b=fc_b)


def _split4(w):
    # PyTorch gate-block order along axis 0: [i, f, g, o]
    return jnp.split(w, 4, axis=0)


def pack_params(raw):
    """Raw PyTorch-layout weights -> wavefront-packed kernel weights (2 slabs)."""
    assert NUM_LAYERS == 2, "wavefront kernel is specialized to 2 LSTM layers"
    H = HIDDEN_DIM
    w_ih0, w_hh0, b_ih0, b_hh0 = raw["lstm"][0]
    w_ih1, w_hh1, b_ih1, b_hh1 = raw["lstm"][1]

    i0h, f0h, g0h, o0h = _split4(w_hh0)          # (H, H): layer-0 recurrent
    i1x, f1x, g1x, o1x = _split4(w_ih1)          # (H, H): layer-1 input (from h0)
    i1h, f1h, g1h, o1h = _split4(w_hh1)          # (H, H): layer-1 recurrent
    Z = jnp.zeros((H, H), jnp.float32)

    # Joint gate column order: [i0 i1 | f0 f1 | o0 o1 | g0 g1] (H lanes each).
    # Row blocks of the fused weight correspond to the [h0 | h1] state slab.
    top = jnp.concatenate([i0h.T, i1x.T, f0h.T, f1x.T, o0h.T, o1x.T, g0h.T, g1x.T], axis=1)
    bot = jnp.concatenate([Z,     i1h.T, Z,     f1h.T, Z,     o1h.T, Z,     g1h.T], axis=1)
    w_blk = jnp.concatenate([top, bot], axis=0)                       # (2H, 8H)

    # sigmoid(x) = 0.5*tanh(0.5x)+0.5: fold the 0.5 pre-scale into every i/f/o column.
    scale = jnp.concatenate([jnp.full((6 * H,), 0.5, jnp.float32),
                             jnp.ones((2 * H,), jnp.float32)])
    w_blk = w_blk * scale[None, :]

    # Layer-0 input projection rows (input_dim == 2), expanded to the joint layout.
    i0x, f0x, g0x, o0x = _split4(w_ih0)          # (H, 2) each
    zh = jnp.zeros((H,), jnp.float32)

    def in_row(r):
        return jnp.concatenate([i0x.T[r], zh, f0x.T[r], zh,
                                o0x.T[r], zh, g0x.T[r], zh]) * scale

    bi0, bf0, bg0, bo0 = jnp.split(b_ih0 + b_hh0, 4)
    bi1, bf1, bg1, bo1 = jnp.split(b_ih1 + b_hh1, 4)
    bias_j = jnp.concatenate([bi0, bi1, bf0, bf1, bo0, bo1, bg0, bg1]) * scale
    bias0_j = jnp.concatenate([bi0, zh, bf0, zh, bo0, zh, bg0, zh]) * scale

    # FC with repeat_interleave folded into its columns, zero-padded over the h0 half
    # of the state slab and out to a 128-lane block (clean bf16 tiling).
    fc_w_rep = jnp.repeat(raw["fc_w"].T, POOL_K, axis=1)              # (H, OUT_W)
    fc_blk = jnp.zeros((2 * H, 128), jnp.float32).at[H:, :OUT_W].set(fc_w_rep)
    fcb_row = jnp.zeros((8 * H,), jnp.float32).at[:OUT_W].set(
        jnp.repeat(raw["fc_b"], POOL_K))

    w_all = jnp.concatenate([w_blk, fc_blk], axis=1).astype(jnp.bfloat16)  # (2H, 8H+128)
    pvec = jnp.stack([in_row(0), in_row(1), bias_j, bias0_j, fcb_row]
                     ).astype(jnp.float32)                                 # (5, 8H)
    return dict(w_all=w_all, pvec=pvec)


# ----------------------------------------------------------------------------
# Pure-JAX reference (follows the PyTorch forward exactly, PyTorch gate order).
# ----------------------------------------------------------------------------
def lstm_model_reference(x, raw):
    H = HIDDEN_DIM
    B = x.shape[0]
    z = x.reshape(B, 2, -1)
    Lp = z.shape[-1] // POOL_K
    pooled = jnp.max(z[:, :, : Lp * POOL_K].reshape(B, 2, Lp, POOL_K), axis=-1)
    seq = pooled.reshape(B, -1, 2)                          # (B, T, 2)
    h = [jnp.zeros((B, H), jnp.float32) for _ in range(NUM_LAYERS)]
    c = [jnp.zeros((B, H), jnp.float32) for _ in range(NUM_LAYERS)]
    for t in range(seq.shape[1]):
        inp = seq[:, t, :]
        for l in range(NUM_LAYERS):
            w_ih, w_hh, b_ih, b_hh = raw["lstm"][l]
            gates = inp @ w_ih.T + h[l] @ w_hh.T + b_ih + b_hh
            i_g = jax.nn.sigmoid(gates[:, :H])
            f_g = jax.nn.sigmoid(gates[:, H:2 * H])
            g_g = jnp.tanh(gates[:, 2 * H:3 * H])
            o_g = jax.nn.sigmoid(gates[:, 3 * H:])
            c[l] = f_g * c[l] + i_g * g_g
            h[l] = o_g * jnp.tanh(c[l])
            inp = h[l]
    out = h[-1] @ raw["fc_w"].T + raw["fc_b"]
    return jnp.repeat(out, POOL_K, axis=1)


if __name__ == "__main__":
    key = jax.random.PRNGKey(0)
    kx, kp = jax.random.split(key)
    # PyTorch-style NCW input: batch=2, channels=4, width=16 -> pooled LSTM seq T=16
    x = jax.random.normal(kx, (2, 4, 16), jnp.float32)
    raw = init_raw_params(kp)
    params = pack_params(raw)

    fwd = jax.jit(lstm_model_forward)
    out = jax.block_until_ready(fwd(x, params))

    ref = lstm_model_reference(x, raw)
    assert out.shape == (2, OUT_W), out.shape
    err = float(jnp.max(jnp.abs(out - ref)))
    assert jnp.allclose(out, ref, atol=2e-3, rtol=2e-3), err
    print("KERNEL_OK")
</pallas_src>

<mosaic_0001>
module attributes {stable_mosaic.version = 11 : i64} {
  func.func @kernel(%arg0: memref<32x4xf32, #tpu.memory_space<vmem>>, %arg1: memref<64x384xbf16, #tpu.memory_space<vmem>>, %arg2: memref<5x256xf32, #tpu.memory_space<vmem>>, %arg3: memref<2x8xf32, #tpu.memory_space<vmem>>) attributes {dimension_semantics = [], scalar_prefetch = 0 : i64, scratch_operands = 0 : i64, tpu.core_type = #tpu.core_type<tc>} {
    %c0 = arith.constant 0 : index
    %c0_0 = arith.constant 0 : index
    %0 = vector.load %arg0[%c0, %c0_0] : memref<32x4xf32, #tpu.memory_space<vmem>>, vector<32x4xf32>
    %1 = vector.extract_strided_slice %0 {offsets = [0, 0], sizes = [32, 2], strides = [1, 1]} : vector<32x4xf32> to vector<32x2xf32>
    %cst = arith.constant dense<0xFF800000> : vector<32xf32>
    %2 = vector.multi_reduction <maximumf>, %1, %cst [1] : vector<32x2xf32> to vector<32xf32>
    %3 = vector.shape_cast %2 : vector<32xf32> to vector<32x1xf32>
    %4 = vector.extract_strided_slice %0 {offsets = [0, 2], sizes = [32, 2], strides = [1, 1]} : vector<32x4xf32> to vector<32x2xf32>
    %cst_1 = arith.constant dense<0xFF800000> : vector<32xf32>
    %5 = vector.multi_reduction <maximumf>, %4, %cst_1 [1] : vector<32x2xf32> to vector<32xf32>
    %6 = vector.shape_cast %5 : vector<32xf32> to vector<32x1xf32>
    %c0_2 = arith.constant 0 : index
    %c0_3 = arith.constant 0 : index
    %7 = vector.load %arg1[%c0_2, %c0_3] : memref<64x384xbf16, #tpu.memory_space<vmem>>, vector<64x384xbf16>
    %8 = vector.extract_strided_slice %7 {offsets = [0, 0], sizes = [64, 256], strides = [1, 1]} : vector<64x384xbf16> to vector<64x256xbf16>
    %9 = vector.extract_strided_slice %7 {offsets = [0, 256], sizes = [64, 8], strides = [1, 1]} : vector<64x384xbf16> to vector<64x8xbf16>
    %c0_4 = arith.constant 0 : index
    %c0_5 = arith.constant 0 : index
    %10 = vector.load %arg2[%c0_4, %c0_5] : memref<5x256xf32, #tpu.memory_space<vmem>>, vector<5x256xf32>
    %11 = vector.extract_strided_slice %10 {offsets = [0, 0], sizes = [1, 256], strides = [1, 1]} : vector<5x256xf32> to vector<1x256xf32>
    %12 = vector.extract_strided_slice %10 {offsets = [1, 0], sizes = [1, 256], strides = [1, 1]} : vector<5x256xf32> to vector<1x256xf32>
    %13 = vector.extract_strided_slice %10 {offsets = [2, 0], sizes = [1, 256], strides = [1, 1]} : vector<5x256xf32> to vector<1x256xf32>
    %14 = vector.extract_strided_slice %10 {offsets = [3, 0], sizes = [1, 256], strides = [1, 1]} : vector<5x256xf32> to vector<1x256xf32>
    %15 = vector.extract_strided_slice %10 {offsets = [4, 0], sizes = [1, 8], strides = [1, 1]} : vector<5x256xf32> to vector<1x8xf32>
    %16 = vector.broadcast %3 : vector<32x1xf32> to vector<32x256xf32>
    %17 = vector.broadcast %11 : vector<1x256xf32> to vector<32x256xf32>
    %18 = arith.mulf %16, %17 : vector<32x256xf32>
    %19 = vector.broadcast %6 : vector<32x1xf32> to vector<32x256xf32>
    %20 = vector.broadcast %12 : vector<1x256xf32> to vector<32x256xf32>
    %21 = arith.mulf %19, %20 : vector<32x256xf32>
    %22 = arith.addf %18, %21 : vector<32x256xf32>
    %23 = vector.broadcast %13 : vector<1x256xf32> to vector<32x256xf32>
    %24 = arith.addf %22, %23 : vector<32x256xf32>
    %25 = vector.extract_strided_slice %3 {offsets = [0, 0], sizes = [2, 1], strides = [1, 1]} : vector<32x1xf32> to vector<2x1xf32>
    %26 = vector.broadcast %25 : vector<2x1xf32> to vector<2x256xf32>
    %27 = vector.broadcast %11 : vector<1x256xf32> to vector<2x256xf32>
    %28 = arith.mulf %26, %27 : vector<2x256xf32>
    %29 = vector.extract_strided_slice %6 {offsets = [0, 0], sizes = [2, 1], strides = [1, 1]} : vector<32x1xf32> to vector<2x1xf32>
    %30 = vector.broadcast %29 : vector<2x1xf32> to vector<2x256xf32>
    %31 = vector.broadcast %12 : vector<1x256xf32> to vector<2x256xf32>
    %32 = arith.mulf %30, %31 : vector<2x256xf32>
    %33 = arith.addf %28, %32 : vector<2x256xf32>
    %34 = vector.broadcast %14 : vector<1x256xf32> to vector<2x256xf32>
    %35 = arith.addf %33, %34 : vector<2x256xf32>
    %cst_6 = arith.constant 0.000000e+00 : f32
    %36 = vector.broadcast %cst_6 : f32 to vector<2x64xf32>
    %37 = math.tanh %35 : vector<2x256xf32>
    %38 = vector.extract_strided_slice %37 {offsets = [0, 0], sizes = [2, 64], strides = [1, 1]} : vector<2x256xf32> to vector<2x64xf32>
    %cst_7 = arith.constant 5.000000e-01 : f32
    %39 = vector.broadcast %cst_7 : f32 to vector<2x64xf32>
    %40 = arith.mulf %38, %39 : vector<2x64xf32>
    %cst_8 = arith.constant 5.000000e-01 : f32
    %41 = vector.broadcast %cst_8 : f32 to vector<2x64xf32>
    %42 = arith.addf %40, %41 : vector<2x64xf32>
    %43 = vector.extract_strided_slice %37 {offsets = [0, 64], sizes = [2, 64], strides = [1, 1]} : vector<2x256xf32> to vector<2x64xf32>
    %cst_9 = arith.constant 5.000000e-01 : f32
    %44 = vector.broadcast %cst_9 : f32 to vector<2x64xf32>
    %45 = arith.mulf %43, %44 : vector<2x64xf32>
    %cst_10 = arith.constant 5.000000e-01 : f32
    %46 = vector.broadcast %cst_10 : f32 to vector<2x64xf32>
    %47 = arith.addf %45, %46 : vector<2x64xf32>
    %48 = vector.extract_strided_slice %37 {offsets = [0, 128], sizes = [2, 64], strides = [1, 1]} : vector<2x256xf32> to vector<2x64xf32>
    %cst_11 = arith.constant 5.000000e-01 : f32
    %49 = vector.broadcast %cst_11 : f32 to vector<2x64xf32>
    %50 = arith.mulf %48, %49 : vector<2x64xf32>
    %cst_12 = arith.constant 5.000000e-01 : f32
    %51 = vector.broadcast %cst_12 : f32 to vector<2x64xf32>
    %52 = arith.addf %50, %51 : vector<2x64xf32>
    %53 = vector.extract_strided_slice %37 {offsets = [0, 192], sizes = [2, 64], strides = [1, 1]} : vector<2x256xf32> to vector<2x64xf32>
    %54 = arith.mulf %47, %36 : vector<2x64xf32>
    %55 = arith.mulf %42, %53 : vector<2x64xf32>
    %56 = arith.addf %54, %55 : vector<2x64xf32>
    %57 = math.tanh %56 : vector<2x64xf32>
    %58 = arith.mulf %52, %57 : vector<2x64xf32>
    %59 = arith.truncf %58 : vector<2x64xf32> to vector<2x64xbf16>
    %cst_13 = arith.constant dense<0.000000e+00> : vector<2x256xf32>
    %60 = tpu.matmul %59, %8, %cst_13 {dimension_numbers = #tpu.dot_dimension_numbers<[1], [0], [0], [1], [0, 0, 1, 1], [], []>} : vector<2x64xbf16>, vector<64x256xbf16>, vector<2x256xf32> -> vector<2x256xf32>
    %61 = vector.extract_strided_slice %24 {offsets = [2, 0], sizes = [2, 256], strides = [1, 1]} : vector<32x256xf32> to vector<2x256xf32>
    %62 = arith.addf %60, %61 : vector<2x256xf32>
    %63 = math.tanh %62 : vector<2x256xf32>
    %64 = vector.extract_strided_slice %63 {offsets = [0, 0], sizes = [2, 64], strides = [1, 1]} : vector<2x256xf32> to vector<2x64xf32>
    %cst_14 = arith.constant 5.000000e-01 : f32
    %65 = vector.broadcast %cst_14 : f32 to vector<2x64xf32>
    %66 = arith.mulf %64, %65 : vector<2x64xf32>
    %cst_15 = arith.constant 5.000000e-01 : f32
    %67 = vector.broadcast %cst_15 : f32 to vector<2x64xf32>
    %68 = arith.addf %66, %67 : vector<2x64xf32>
    %69 = vector.extract_strided_slice %63 {offsets = [0, 64], sizes = [2, 64], strides = [1, 1]} : vector<2x256xf32> to vector<2x64xf32>
    %cst_16 = arith.constant 5.000000e-01 : f32
    %70 = vector.broadcast %cst_16 : f32 to vector<2x64xf32>
    %71 = arith.mulf %69, %70 : vector<2x64xf32>
    %cst_17 = arith.constant 5.000000e-01 : f32
    %72 = vector.broadcast %cst_17 : f32 to vector<2x64xf32>
    %73 = arith.addf %71, %72 : vector<2x64xf32>
    %74 = vector.extract_strided_slice %63 {offsets = [0, 128], sizes = [2, 64], strides = [1, 1]} : vector<2x256xf32> to vector<2x64xf32>
    %cst_18 = arith.constant 5.000000e-01 : f32
    %75 = vector.broadcast %cst_18 : f32 to vector<2x64xf32>
    %76 = arith.mulf %74, %75 : vector<2x64xf32>
    %cst_19 = arith.constant 5.000000e-01 : f32
    %77 = vector.broadcast %cst_19 : f32 to vector<2x64xf32>
    %78 = arith.addf %76, %77 : vector<2x64xf32>
    %79 = vector.extract_strided_slice %63 {offsets = [0, 192], sizes = [2, 64], strides = [1, 1]} : vector<2x256xf32> to vector<2x64xf32>
    %80 = arith.mulf %73, %56 : vector<2x64xf32>
    %81 = arith.mulf %68, %79 : vector<2x64xf32>
    %82 = arith.addf %80, %81 : vector<2x64xf32>
    %83 = math.tanh %82 : vector<2x64xf32>
    %84 = arith.mulf %78, %83 : vector<2x64xf32>
    %85 = arith.truncf %84 : vector<2x64xf32> to vector<2x64xbf16>
    %cst_20 = arith.constant dense<0.000000e+00> : vector<2x256xf32>
    %86 = tpu.matmul %85, %8, %cst_20 {dimension_numbers = #tpu.dot_dimension_numbers<[1], [0], [0], [1], [0, 0, 1, 1], [], []>} : vector<2x64xbf16>, vector<64x256xbf16>, vector<2x256xf32> -> vector<2x256xf32>
    %87 = vector.extract_strided_slice %24 {offsets = [4, 0], sizes = [2, 256], strides = [1, 1]} : vector<32x256xf32> to vector<2x256xf32>
    %88 = arith.addf %86, %87 : vector<2x256xf32>
    %89 = math.tanh %88 : vector<2x256xf32>
    %90 = vector.extract_strided_slice %89 {offsets = [0, 0], sizes = [2, 64], strides = [1, 1]} : vector<2x256xf32> to vector<2x64xf32>
    %cst_21 = arith.constant 5.000000e-01 : f32
    %91 = vector.broadcast %cst_21 : f32 to vector<2x64xf32>
    %92 = arith.mulf %90, %91 : vector<2x64xf32>
    %cst_22 = arith.constant 5.000000e-01 : f32
    %93 = vector.broadcast %cst_22 : f32 to vector<2x64xf32>
    %94 = arith.addf %92, %93 : vector<2x64xf32>
    %95 = vector.extract_strided_slice %89 {offsets = [0, 64], sizes = [2, 64], strides = [1, 1]} : vector<2x256xf32> to vector<2x64xf32>
    %cst_23 = arith.constant 5.000000e-01 : f32
    %96 = vector.broadcast %cst_23 : f32 to vector<2x64xf32>
    %97 = arith.mulf %95, %96 : vector<2x64xf32>
    %cst_24 = arith.constant 5.000000e-01 : f32
    %98 = vector.broadcast %cst_24 : f32 to vector<2x64xf32>
    %99 = arith.addf %97, %98 : vector<2x64xf32>
    %100 = vector.extract_strided_slice %89 {offsets = [0, 128], sizes = [2, 64], strides = [1, 1]} : vector<2x256xf32> to vector<2x64xf32>
    %cst_25 = arith.constant 5.000000e-01 : f32
    %101 = vector.broadcast %cst_25 : f32 to vector<2x64xf32>
    %102 = arith.mulf %100, %101 : vector<2x64xf32>
    %cst_26 = arith.constant 5.000000e-01 : f32
    %103 = vector.broadcast %cst_26 : f32 to vector<2x64xf32>
    %104 = arith.addf %102, %103 : vector<2x64xf32>
    %105 = vector.extract_strided_slice %89 {offsets = [0, 192], sizes = [2, 64], strides = [1, 1]} : vector<2x256xf32> to vector<2x64xf32>
    %106 = arith.mulf %99, %82 : vector<2x64xf32>
    %107 = arith.mulf %94, %105 : vector<2x64xf32>
    %108 = arith.addf %106, %107 : vector<2x64xf32>
    %109 = math.tanh %108 : vector<2x64xf32>
    %110 = arith.mulf %104, %109 : vector<2x64xf32>
    %111 = arith.truncf %110 : vector<2x64xf32> to vector<2x64xbf16>
    %cst_27 = arith.constant dense<0.000000e+00> : vector<2x256xf32>
    %112 = tpu.matmul %111, %8, %cst_27 {dimension_numbers = #tpu.dot_dimension_numbers<[1], [0], [0], [1], [0, 0, 1, 1], [], []>} : vector<2x64xbf16>, vector<64x256xbf16>, vector<2x256xf32> -> vector<2x256xf32>
    %113 = vector.extract_strided_slice %24 {offsets = [6, 0], sizes = [2, 256], strides = [1, 1]} : vector<32x256xf32> to vector<2x256xf32>
    %114 = arith.addf %112, %113 : vector<2x256xf32>
    %115 = math.tanh %114 : vector<2x256xf32>
    %116 = vector.extract_strided_slice %115 {offsets = [0, 0], sizes = [2, 64], strides = [1, 1]} : vector<2x256xf32> to vector<2x64xf32>
    %cst_28 = arith.constant 5.000000e-01 : f32
    %117 = vector.broadcast %cst_28 : f32 to vector<2x64xf32>
    %118 = arith.mulf %116, %117 : vector<2x64xf32>
    %cst_29 = arith.constant 5.000000e-01 : f32
    %119 = vector.broadcast %cst_29 : f32 to vector<2x64xf32>
    %120 = arith.addf %118, %119 : vector<2x64xf32>
    %121 = vector.extract_strided_slice %115 {offsets = [0, 64], sizes = [2, 64], strides = [1, 1]} : vector<2x256xf32> to vector<2x64xf32>
    %cst_30 = arith.constant 5.000000e-01 : f32
    %122 = vector.broadcast %cst_30 : f32 to vector<2x64xf32>
    %123 = arith.mulf %121, %122 : vector<2x64xf32>
    %cst_31 = arith.constant 5.000000e-01 : f32
    %124 = vector.broadcast %cst_31 : f32 to vector<2x64xf32>
    %125 = arith.addf %123, %124 : vector<2x64xf32>
    %126 = vector.extract_strided_slice %115 {offsets = [0, 128], sizes = [2, 64], strides = [1, 1]} : vector<2x256xf32> to vector<2x64xf32>
    %cst_32 = arith.constant 5.000000e-01 : f32
    %127 = vector.broadcast %cst_32 : f32 to vector<2x64xf32>
    %128 = arith.mulf %126, %127 : vector<2x64xf32>
    %cst_33 = arith.constant 5.000000e-01 : f32
    %129 = vector.broadcast %cst_33 : f32 to vector<2x64xf32>
    %130 = arith.addf %128, %129 : vector<2x64xf32>
    %131 = vector.extract_strided_slice %115 {offsets = [0, 192], sizes = [2, 64], strides = [1, 1]} : vector<2x256xf32> to vector<2x64xf32>
    %132 = arith.mulf %125, %108 : vector<2x64xf32>
    %133 = arith.mulf %120, %131 : vector<2x64xf32>
    %134 = arith.addf %132, %133 : vector<2x64xf32>
    %135 = math.tanh %134 : vector<2x64xf32>
    %136 = arith.mulf %130, %135 : vector<2x64xf32>
    %137 = arith.truncf %136 : vector<2x64xf32> to vector<2x64xbf16>
    %cst_34 = arith.constant dense<0.000000e+00> : vector<2x256xf32>
    %138 = tpu.matmul %137, %8, %cst_34 {dimension_numbers = #tpu.dot_dimension_numbers<[1], [0], [0], [1], [0, 0, 1, 1], [], []>} : vector<2x64xbf16>, vector<64x256xbf16>, vector<2x256xf32> -> vector<2x256xf32>
    %139 = vector.extract_strided_slice %24 {offsets = [8, 0], sizes = [2, 256], strides = [1, 1]} : vector<32x256xf32> to vector<2x256xf32>
    %140 = arith.addf %138, %139 : vector<2x256xf32>
    %141 = math.tanh %140 : vector<2x256xf32>
    %142 = vector.extract_strided_slice %141 {offsets = [0, 0], sizes = [2, 64], strides = [1, 1]} : vector<2x256xf32> to vector<2x64xf32>
    %cst_35 = arith.constant 5.000000e-01 : f32
    %143 = vector.broadcast %cst_35 : f32 to vector<2x64xf32>
    %144 = arith.mulf %142, %143 : vector<2x64xf32>
    %cst_36 = arith.constant 5.000000e-01 : f32
    %145 = vector.broadcast %cst_36 : f32 to vector<2x64xf32>
    %146 = arith.addf %144, %145 : vector<2x64xf32>
    %147 = vector.extract_strided_slice %141 {offsets = [0, 64], sizes = [2, 64], strides = [1, 1]} : vector<2x256xf32> to vector<2x64xf32>
    %cst_37 = arith.constant 5.000000e-01 : f32
    %148 = vector.broadcast %cst_37 : f32 to vector<2x64xf32>
    %149 = arith.mulf %147, %148 : vector<2x64xf32>
    %cst_38 = arith.constant 5.000000e-01 : f32
    %150 = vector.broadcast %cst_38 : f32 to vector<2x64xf32>
    %151 = arith.addf %149, %150 : vector<2x64xf32>
    %152 = vector.extract_strided_slice %141 {offsets = [0, 128], sizes = [2, 64], strides = [1, 1]} : vector<2x256xf32> to vector<2x64xf32>
    %cst_39 = arith.constant 5.000000e-01 : f32
    %153 = vector.broadcast %cst_39 : f32 to vector<2x64xf32>
    %154 = arith.mulf %152, %153 : vector<2x64xf32>
    %cst_40 = arith.constant 5.000000e-01 : f32
    %155 = vector.broadcast %cst_40 : f32 to vector<2x64xf32>
    %156 = arith.addf %154, %155 : vector<2x64xf32>
    %157 = vector.extract_strided_slice %141 {offsets = [0, 192], sizes = [2, 64], strides = [1, 1]} : vector<2x256xf32> to vector<2x64xf32>
    %158 = arith.mulf %151, %134 : vector<2x64xf32>
    %159 = arith.mulf %146, %157 : vector<2x64xf32>
    %160 = arith.addf %158, %159 : vector<2x64xf32>
    %161 = math.tanh %160 : vector<2x64xf32>
    %162 = arith.mulf %156, %161 : vector<2x64xf32>
    %163 = arith.truncf %162 : vector<2x64xf32> to vector<2x64xbf16>
    %cst_41 = arith.constant dense<0.000000e+00> : vector<2x256xf32>
    %164 = tpu.matmul %163, %8, %cst_41 {dimension_numbers = #tpu.dot_dimension_numbers<[1], [0], [0], [1], [0, 0, 1, 1], [], []>} : vector<2x64xbf16>, vector<64x256xbf16>, vector<2x256xf32> -> vector<2x256xf32>
    %165 = vector.extract_strided_slice %24 {offsets = [10, 0], sizes = [2, 256], strides = [1, 1]} : vector<32x256xf32> to vector<2x256xf32>
    %166 = arith.addf %164, %165 : vector<2x256xf32>
    %167 = math.tanh %166 : vector<2x256xf32>
    %168 = vector.extract_strided_slice %167 {offsets = [0, 0], sizes = [2, 64], strides = [1, 1]} : vector<2x256xf32> to vector<2x64xf32>
    %cst_42 = arith.constant 5.000000e-01 : f32
    %169 = vector.broadcast %cst_42 : f32 to vector<2x64xf32>
    %170 = arith.mulf %168, %169 : vector<2x64xf32>
    %cst_43 = arith.constant 5.000000e-01 : f32
    %171 = vector.broadcast %cst_43 : f32 to vector<2x64xf32>
    %172 = arith.addf %170, %171 : vector<2x64xf32>
    %173 = vector.extract_strided_slice %167 {offsets = [0, 64], sizes = [2, 64], strides = [1, 1]} : vector<2x256xf32> to vector<2x64xf32>
    %cst_44 = arith.constant 5.000000e-01 : f32
    %174 = vector.broadcast %cst_44 : f32 to vector<2x64xf32>
    %175 = arith.mulf %173, %174 : vector<2x64xf32>
    %cst_45 = arith.constant 5.000000e-01 : f32
    %176 = vector.broadcast %cst_45 : f32 to vector<2x64xf32>
    %177 = arith.addf %175, %176 : vector<2x64xf32>
    %178 = vector.extract_strided_slice %167 {offsets = [0, 128], sizes = [2, 64], strides = [1, 1]} : vector<2x256xf32> to vector<2x64xf32>
    %cst_46 = arith.constant 5.000000e-01 : f32
    %179 = vector.broadcast %cst_46 : f32 to vector<2x64xf32>
    %180 = arith.mulf %178, %179 : vector<2x64xf32>
    %cst_47 = arith.constant 5.000000e-01 : f32
    %181 = vector.broadcast %cst_47 : f32 to vector<2x64xf32>
    %182 = arith.addf %180, %181 : vector<2x64xf32>
    %183 = vector.extract_strided_slice %167 {offsets = [0, 192], sizes = [2, 64], strides = [1, 1]} : vector<2x256xf32> to vector<2x64xf32>
    %184 = arith.mulf %177, %160 : vector<2x64xf32>
    %185 = arith.mulf %172, %183 : vector<2x64xf32>
    %186 = arith.addf %184, %185 : vector<2x64xf32>
    %187 = math.tanh %186 : vector<2x64xf32>
    %188 = arith.mulf %182, %187 : vector<2x64xf32>
    %189 = arith.truncf %188 : vector<2x64xf32> to vector<2x64xbf16>
    %cst_48 = arith.constant dense<0.000000e+00> : vector<2x256xf32>
    %190 = tpu.matmul %189, %8, %cst_48 {dimension_numbers = #tpu.dot_dimension_numbers<[1], [0], [0], [1], [0, 0, 1, 1], [], []>} : vector<2x64xbf16>, vector<64x256xbf16>, vector<2x256xf32> -> vector<2x256xf32>
    %191 = vector.extract_strided_slice %24 {offsets = [12, 0], sizes = [2, 256], strides = [1, 1]} : vector<32x256xf32> to vector<2x256xf32>
    %192 = arith.addf %190, %191 : vector<2x256xf32>
    %193 = math.tanh %192 : vector<2x256xf32>
    %194 = vector.extract_strided_slice %193 {offsets = [0, 0], sizes = [2, 64], strides = [1, 1]} : vector<2x256xf32> to vector<2x64xf32>
    %cst_49 = arith.constant 5.000000e-01 : f32
    %195 = vector.broadcast %cst_49 : f32 to vector<2x64xf32>
    %196 = arith.mulf %194, %195 : vector<2x64xf32>
    %cst_50 = arith.constant 5.000000e-01 : f32
    %197 = vector.broadcast %cst_50 : f32 to vector<2x64xf32>
    %198 = arith.addf %196, %197 : vector<2x64xf32>
    %199 = vector.extract_strided_slice %193 {offsets = [0, 64], sizes = [2, 64], strides = [1, 1]} : vector<2x256xf32> to vector<2x64xf32>
    %cst_51 = arith.constant 5.000000e-01 : f32
    %200 = vector.broadcast %cst_51 : f32 to vector<2x64xf32>
    %201 = arith.mulf %199, %200 : vector<2x64xf32>
    %cst_52 = arith.constant 5.000000e-01 : f32
    %202 = vector.broadcast %cst_52 : f32 to vector<2x64xf32>
    %203 = arith.addf %201, %202 : vector<2x64xf32>
    %204 = vector.extract_strided_slice %193 {offsets = [0, 128], sizes = [2, 64], strides = [1, 1]} : vector<2x256xf32> to vector<2x64xf32>
    %cst_53 = arith.constant 5.000000e-01 : f32
    %205 = vector.broadcast %cst_53 : f32 to vector<2x64xf32>
    %206 = arith.mulf %204, %205 : vector<2x64xf32>
    %cst_54 = arith.constant 5.000000e-01 : f32
    %207 = vector.broadcast %cst_54 : f32 to vector<2x64xf32>
    %208 = arith.addf %206, %207 : vector<2x64xf32>
    %209 = vector.extract_strided_slice %193 {offsets = [0, 192], sizes = [2, 64], strides = [1, 1]} : vector<2x256xf32> to vector<2x64xf32>
    %210 = arith.mulf %203, %186 : vector<2x64xf32>
    %211 = arith.mulf %198, %209 : vector<2x64xf32>
    %212 = arith.addf %210, %211 : vector<2x64xf32>
    %213 = math.tanh %212 : vector<2x64xf32>
    %214 = arith.mulf %208, %213 : vector<2x64xf32>
    %215 = arith.truncf %214 : vector<2x64xf32> to vector<2x64xbf16>
    %cst_55 = arith.constant dense<0.000000e+00> : vector<2x256xf32>
    %216 = tpu.matmul %215, %8, %cst_55 {dimension_numbers = #tpu.dot_dimension_numbers<[1], [0], [0], [1], [0, 0, 1, 1], [], []>} : vector<2x64xbf16>, vector<64x256xbf16>, vector<2x256xf32> -> vector<2x256xf32>
    %217 = vector.extract_strided_slice %24 {offsets = [14, 0], sizes = [2, 256], strides = [1, 1]} : vector<32x256xf32> to vector<2x256xf32>
    %218 = arith.addf %216, %217 : vector<2x256xf32>
    %219 = math.tanh %218 : vector<2x256xf32>
    %220 = vector.extract_strided_slice %219 {offsets = [0, 0], sizes = [2, 64], strides = [1, 1]} : vector<2x256xf32> to vector<2x64xf32>
    %cst_56 = arith.constant 5.000000e-01 : f32
    %221 = vector.broadcast %cst_56 : f32 to vector<2x64xf32>
    %222 = arith.mulf %220, %221 : vector<2x64xf32>
    %cst_57 = arith.constant 5.000000e-01 : f32
    %223 = vector.broadcast %cst_57 : f32 to vector<2x64xf32>
    %224 = arith.addf %222, %223 : vector<2x64xf32>
    %225 = vector.extract_strided_slice %219 {offsets = [0, 64], sizes = [2, 64], strides = [1, 1]} : vector<2x256xf32> to vector<2x64xf32>
    %cst_58 = arith.constant 5.000000e-01 : f32
    %226 = vector.broadcast %cst_58 : f32 to vector<2x64xf32>
    %227 = arith.mulf %225, %226 : vector<2x64xf32>
    %cst_59 = arith.constant 5.000000e-01 : f32
    %228 = vector.broadcast %cst_59 : f32 to vector<2x64xf32>
    %229 = arith.addf %227, %228 : vector<2x64xf32>
    %230 = vector.extract_strided_slice %219 {offsets = [0, 128], sizes = [2, 64], strides = [1, 1]} : vector<2x256xf32> to vector<2x64xf32>
    %cst_60 = arith.constant 5.000000e-01 : f32
    %231 = vector.broadcast %cst_60 : f32 to vector<2x64xf32>
    %232 = arith.mulf %230, %231 : vector<2x64xf32>
    %cst_61 = arith.constant 5.000000e-01 : f32
    %233 = vector.broadcast %cst_61 : f32 to vector<2x64xf32>
    %234 = arith.addf %232, %233 : vector<2x64xf32>
    %235 = vector.extract_strided_slice %219 {offsets = [0, 192], sizes = [2, 64], strides = [1, 1]} : vector<2x256xf32> to vector<2x64xf32>
    %236 = arith.mulf %229, %212 : vector<2x64xf32>
    %237 = arith.mulf %224, %235 : vector<2x64xf32>
    %238 = arith.addf %236, %237 : vector<2x64xf32>
    %239 = math.tanh %238 : vector<2x64xf32>
    %240 = arith.mulf %234, %239 : vector<2x64xf32>
    %241 = arith.truncf %240 : vector<2x64xf32> to vector<2x64xbf16>
    %cst_62 = arith.constant dense<0.000000e+00> : vector<2x256xf32>
    %242 = tpu.matmul %241, %8, %cst_62 {dimension_numbers = #tpu.dot_dimension_numbers<[1], [0], [0], [1], [0, 0, 1, 1], [], []>} : vector<2x64xbf16>, vector<64x256xbf16>, vector<2x256xf32> -> vector<2x256xf32>
    %243 = vector.extract_strided_slice %24 {offsets = [16, 0], sizes = [2, 256], strides = [1, 1]} : vector<32x256xf32> to vector<2x256xf32>
    %244 = arith.addf %242, %243 : vector<2x256xf32>
    %245 = math.tanh %244 : vector<2x256xf32>
    %246 = vector.extract_strided_slice %245 {offsets = [0, 0], sizes = [2, 64], strides = [1, 1]} : vector<2x256xf32> to vector<2x64xf32>
    %cst_63 = arith.constant 5.000000e-01 : f32
    %247 = vector.broadcast %cst_63 : f32 to vector<2x64xf32>
    %248 = arith.mulf %246, %247 : vector<2x64xf32>
    %cst_64 = arith.constant 5.000000e-01 : f32
    %249 = vector.broadcast %cst_64 : f32 to vector<2x64xf32>
    %250 = arith.addf %248, %249 : vector<2x64xf32>
    %251 = vector.extract_strided_slice %245 {offsets = [0, 64], sizes = [2, 64], strides = [1, 1]} : vector<2x256xf32> to vector<2x64xf32>
    %cst_65 = arith.constant 5.000000e-01 : f32
    %252 = vector.broadcast %cst_65 : f32 to vector<2x64xf32>
    %253 = arith.mulf %251, %252 : vector<2x64xf32>
    %cst_66 = arith.constant 5.000000e-01 : f32
    %254 = vector.broadcast %cst_66 : f32 to vector<2x64xf32>
    %255 = arith.addf %253, %254 : vector<2x64xf32>
    %256 = vector.extract_strided_slice %245 {offsets = [0, 128], sizes = [2, 64], strides = [1, 1]} : vector<2x256xf32> to vector<2x64xf32>
    %cst_67 = arith.constant 5.000000e-01 : f32
    %257 = vector.broadcast %cst_67 : f32 to vector<2x64xf32>
    %258 = arith.mulf %256, %257 : vector<2x64xf32>
    %cst_68 = arith.constant 5.000000e-01 : f32
    %259 = vector.broadcast %cst_68 : f32 to vector<2x64xf32>
    %260 = arith.addf %258, %259 : vector<2x64xf32>
    %261 = vector.extract_strided_slice %245 {offsets = [0, 192], sizes = [2, 64], strides = [1, 1]} : vector<2x256xf32> to vector<2x64xf32>
    %262 = arith.mulf %255, %238 : vector<2x64xf32>
    %263 = arith.mulf %250, %261 : vector<2x64xf32>
    %264 = arith.addf %262, %263 : vector<2x64xf32>
    %265 = math.tanh %264 : vector<2x64xf32>
    %266 = arith.mulf %260, %265 : vector<2x64xf32>
    %267 = arith.truncf %266 : vector<2x64xf32> to vector<2x64xbf16>
    %cst_69 = arith.constant dense<0.000000e+00> : vector<2x256xf32>
    %268 = tpu.matmul %267, %8, %cst_69 {dimension_numbers = #tpu.dot_dimension_numbers<[1], [0], [0], [1], [0, 0, 1, 1], [], []>} : vector<2x64xbf16>, vector<64x256xbf16>, vector<2x256xf32> -> vector<2x256xf32>
    %269 = vector.extract_strided_slice %24 {offsets = [18, 0], sizes = [2, 256], strides = [1, 1]} : vector<32x256xf32> to vector<2x256xf32>
    %270 = arith.addf %268, %269 : vector<2x256xf32>
    %271 = math.tanh %270 : vector<2x256xf32>
    %272 = vector.extract_strided_slice %271 {offsets = [0, 0], sizes = [2, 64], strides = [1, 1]} : vector<2x256xf32> to vector<2x64xf32>
    %cst_70 = arith.constant 5.000000e-01 : f32
    %273 = vector.broadcast %cst_70 : f32 to vector<2x64xf32>
    %274 = arith.mulf %272, %273 : vector<2x64xf32>
    %cst_71 = arith.constant 5.000000e-01 : f32
    %275 = vector.broadcast %cst_71 : f32 to vector<2x64xf32>
    %276 = arith.addf %274, %275 : vector<2x64xf32>
    %277 = vector.extract_strided_slice %271 {offsets = [0, 64], sizes = [2, 64], strides = [1, 1]} : vector<2x256xf32> to vector<2x64xf32>
    %cst_72 = arith.constant 5.000000e-01 : f32
    %278 = vector.broadcast %cst_72 : f32 to vector<2x64xf32>
    %279 = arith.mulf %277, %278 : vector<2x64xf32>
    %cst_73 = arith.constant 5.000000e-01 : f32
    %280 = vector.broadcast %cst_73 : f32 to vector<2x64xf32>
    %281 = arith.addf %279, %280 : vector<2x64xf32>
    %282 = vector.extract_strided_slice %271 {offsets = [0, 128], sizes = [2, 64], strides = [1, 1]} : vector<2x256xf32> to vector<2x64xf32>
    %cst_74 = arith.constant 5.000000e-01 : f32
    %283 = vector.broadcast %cst_74 : f32 to vector<2x64xf32>
    %284 = arith.mulf %282, %283 : vector<2x64xf32>
    %cst_75 = arith.constant 5.000000e-01 : f32
    %285 = vector.broadcast %cst_75 : f32 to vector<2x64xf32>
    %286 = arith.addf %284, %285 : vector<2x64xf32>
    %287 = vector.extract_strided_slice %271 {offsets = [0, 192], sizes = [2, 64], strides = [1, 1]} : vector<2x256xf32> to vector<2x64xf32>
    %288 = arith.mulf %281, %264 : vector<2x64xf32>
    %289 = arith.mulf %276, %287 : vector<2x64xf32>
    %290 = arith.addf %288, %289 : vector<2x64xf32>
    %291 = math.tanh %290 : vector<2x64xf32>
    %292 = arith.mulf %286, %291 : vector<2x64xf32>
    %293 = arith.truncf %292 : vector<2x64xf32> to vector<2x64xbf16>
    %cst_76 = arith.constant dense<0.000000e+00> : vector<2x256xf32>
    %294 = tpu.matmul %293, %8, %cst_76 {dimension_numbers = #tpu.dot_dimension_numbers<[1], [0], [0], [1], [0, 0, 1, 1], [], []>} : vector<2x64xbf16>, vector<64x256xbf16>, vector<2x256xf32> -> vector<2x256xf32>
    %295 = vector.extract_strided_slice %24 {offsets = [20, 0], sizes = [2, 256], strides = [1, 1]} : vector<32x256xf32> to vector<2x256xf32>
    %296 = arith.addf %294, %295 : vector<2x256xf32>
    %297 = math.tanh %296 : vector<2x256xf32>
    %298 = vector.extract_strided_slice %297 {offsets = [0, 0], sizes = [2, 64], strides = [1, 1]} : vector<2x256xf32> to vector<2x64xf32>
    %cst_77 = arith.constant 5.000000e-01 : f32
    %299 = vector.broadcast %cst_77 : f32 to vector<2x64xf32>
    %300 = arith.mulf %298, %299 : vector<2x64xf32>
    %cst_78 = arith.constant 5.000000e-01 : f32
    %301 = vector.broadcast %cst_78 : f32 to vector<2x64xf32>
    %302 = arith.addf %300, %301 : vector<2x64xf32>
    %303 = vector.extract_strided_slice %297 {offsets = [0, 64], sizes = [2, 64], strides = [1, 1]} : vector<2x256xf32> to vector<2x64xf32>
    %cst_79 = arith.constant 5.000000e-01 : f32
    %304 = vector.broadcast %cst_79 : f32 to vector<2x64xf32>
    %305 = arith.mulf %303, %304 : vector<2x64xf32>
    %cst_80 = arith.constant 5.000000e-01 : f32
    %306 = vector.broadcast %cst_80 : f32 to vector<2x64xf32>
    %307 = arith.addf %305, %306 : vector<2x64xf32>
    %308 = vector.extract_strided_slice %297 {offsets = [0, 128], sizes = [2, 64], strides = [1, 1]} : vector<2x256xf32> to vector<2x64xf32>
    %cst_81 = arith.constant 5.000000e-01 : f32
    %309 = vector.broadcast %cst_81 : f32 to vector<2x64xf32>
    %310 = arith.mulf %308, %309 : vector<2x64xf32>
    %cst_82 = arith.constant 5.000000e-01 : f32
    %311 = vector.broadcast %cst_82 : f32 to vector<2x64xf32>
    %312 = arith.addf %310, %311 : vector<2x64xf32>
    %313 = vector.extract_strided_slice %297 {offsets = [0, 192], sizes = [2, 64], strides = [1, 1]} : vector<2x256xf32> to vector<2x64xf32>
    %314 = arith.mulf %307, %290 : vector<2x64xf32>
    %315 = arith.mulf %302, %313 : vector<2x64xf32>
    %316 = arith.addf %314, %315 : vector<2x64xf32>
    %317 = math.tanh %316 : vector<2x64xf32>
    %318 = arith.mulf %312, %317 : vector<2x64xf32>
    %319 = arith.truncf %318 : vector<2x64xf32> to vector<2x64xbf16>
    %cst_83 = arith.constant dense<0.000000e+00> : vector<2x256xf32>
    %320 = tpu.matmul %319, %8, %cst_83 {dimension_numbers = #tpu.dot_dimension_numbers<[1], [0], [0], [1], [0, 0, 1, 1], [], []>} : vector<2x64xbf16>, vector<64x256xbf16>, vector<2x256xf32> -> vector<2x256xf32>
    %321 = vector.extract_strided_slice %24 {offsets = [22, 0], sizes = [2, 256], strides = [1, 1]} : vector<32x256xf32> to vector<2x256xf32>
    %322 = arith.addf %320, %321 : vector<2x256xf32>
    %323 = math.tanh %322 : vector<2x256xf32>
    %324 = vector.extract_strided_slice %323 {offsets = [0, 0], sizes = [2, 64], strides = [1, 1]} : vector<2x256xf32> to vector<2x64xf32>
    %cst_84 = arith.constant 5.000000e-01 : f32
    %325 = vector.broadcast %cst_84 : f32 to vector<2x64xf32>
    %326 = arith.mulf %324, %325 : vector<2x64xf32>
    %cst_85 = arith.constant 5.000000e-01 : f32
    %327 = vector.broadcast %cst_85 : f32 to vector<2x64xf32>
    %328 = arith.addf %326, %327 : vector<2x64xf32>
    %329 = vector.extract_strided_slice %323 {offsets = [0, 64], sizes = [2, 64], strides = [1, 1]} : vector<2x256xf32> to vector<2x64xf32>
    %cst_86 = arith.constant 5.000000e-01 : f32
    %330 = vector.broadcast %cst_86 : f32 to vector<2x64xf32>
    %331 = arith.mulf %329, %330 : vector<2x64xf32>
    %cst_87 = arith.constant 5.000000e-01 : f32
    %332 = vector.broadcast %cst_87 : f32 to vector<2x64xf32>
    %333 = arith.addf %331, %332 : vector<2x64xf32>
    %334 = vector.extract_strided_slice %323 {offsets = [0, 128], sizes = [2, 64], strides = [1, 1]} : vector<2x256xf32> to vector<2x64xf32>
    %cst_88 = arith.constant 5.000000e-01 : f32
    %335 = vector.broadcast %cst_88 : f32 to vector<2x64xf32>
    %336 = arith.mulf %334, %335 : vector<2x64xf32>
    %cst_89 = arith.constant 5.000000e-01 : f32
    %337 = vector.broadcast %cst_89 : f32 to vector<2x64xf32>
    %338 = arith.addf %336, %337 : vector<2x64xf32>
    %339 = vector.extract_strided_slice %323 {offsets = [0, 192], sizes = [2, 64], strides = [1, 1]} : vector<2x256xf32> to vector<2x64xf32>
    %340 = arith.mulf %333, %316 : vector<2x64xf32>
    %341 = arith.mulf %328, %339 : vector<2x64xf32>
    %342 = arith.addf %340, %341 : vector<2x64xf32>
    %343 = math.tanh %342 : vector<2x64xf32>
    %344 = arith.mulf %338, %343 : vector<2x64xf32>
    %345 = arith.truncf %344 : vector<2x64xf32> to vector<2x64xbf16>
    %cst_90 = arith.constant dense<0.000000e+00> : vector<2x256xf32>
    %346 = tpu.matmul %345, %8, %cst_90 {dimension_numbers = #tpu.dot_dimension_numbers<[1], [0], [0], [1], [0, 0, 1, 1], [], []>} : vector<2x64xbf16>, vector<64x256xbf16>, vector<2x256xf32> -> vector<2x256xf32>
    %347 = vector.extract_strided_slice %24 {offsets = [24, 0], sizes = [2, 256], strides = [1, 1]} : vector<32x256xf32> to vector<2x256xf32>
    %348 = arith.addf %346, %347 : vector<2x256xf32>
    %349 = math.tanh %348 : vector<2x256xf32>
    %350 = vector.extract_strided_slice %349 {offsets = [0, 0], sizes = [2, 64], strides = [1, 1]} : vector<2x256xf32> to vector<2x64xf32>
    %cst_91 = arith.constant 5.000000e-01 : f32
    %351 = vector.broadcast %cst_91 : f32 to vector<2x64xf32>
    %352 = arith.mulf %350, %351 : vector<2x64xf32>
    %cst_92 = arith.constant 5.000000e-01 : f32
    %353 = vector.broadcast %cst_92 : f32 to vector<2x64xf32>
    %354 = arith.addf %352, %353 : vector<2x64xf32>
    %355 = vector.extract_strided_slice %349 {offsets = [0, 64], sizes = [2, 64], strides = [1, 1]} : vector<2x256xf32> to vector<2x64xf32>
    %cst_93 = arith.constant 5.000000e-01 : f32
    %356 = vector.broadcast %cst_93 : f32 to vector<2x64xf32>
    %357 = arith.mulf %355, %356 : vector<2x64xf32>
    %cst_94 = arith.constant 5.000000e-01 : f32
    %358 = vector.broadcast %cst_94 : f32 to vector<2x64xf32>
    %359 = arith.addf %357, %358 : vector<2x64xf32>
    %360 = vector.extract_strided_slice %349 {offsets = [0, 128], sizes = [2, 64], strides = [1, 1]} : vector<2x256xf32> to vector<2x64xf32>
    %cst_95 = arith.constant 5.000000e-01 : f32
    %361 = vector.broadcast %cst_95 : f32 to vector<2x64xf32>
    %362 = arith.mulf %360, %361 : vector<2x64xf32>
    %cst_96 = arith.constant 5.000000e-01 : f32
    %363 = vector.broadcast %cst_96 : f32 to vector<2x64xf32>
    %364 = arith.addf %362, %363 : vector<2x64xf32>
    %365 = vector.extract_strided_slice %349 {offsets = [0, 192], sizes = [2, 64], strides = [1, 1]} : vector<2x256xf32> to vector<2x64xf32>
    %366 = arith.mulf %359, %342 : vector<2x64xf32>
    %367 = arith.mulf %354, %365 : vector<2x64xf32>
    %368 = arith.addf %366, %367 : vector<2x64xf32>
    %369 = math.tanh %368 : vector<2x64xf32>
    %370 = arith.mulf %364, %369 : vector<2x64xf32>
    %371 = arith.truncf %370 : vector<2x64xf32> to vector<2x64xbf16>
    %cst_97 = arith.constant dense<0.000000e+00> : vector<2x256xf32>
    %372 = tpu.matmul %371, %8, %cst_97 {dimension_numbers = #tpu.dot_dimension_numbers<[1], [0], [0], [1], [0, 0, 1, 1], [], []>} : vector<2x64xbf16>, vector<64x256xbf16>, vector<2x256xf32> -> vector<2x256xf32>
    %373 = vector.extract_strided_slice %24 {offsets = [26, 0], sizes = [2, 256], strides = [1, 1]} : vector<32x256xf32> to vector<2x256xf32>
    %374 = arith.addf %372, %373 : vector<2x256xf32>
    %375 = math.tanh %374 : vector<2x256xf32>
    %376 = vector.extract_strided_slice %375 {offsets = [0, 0], sizes = [2, 64], strides = [1, 1]} : vector<2x256xf32> to vector<2x64xf32>
    %cst_98 = arith.constant 5.000000e-01 : f32
    %377 = vector.broadcast %cst_98 : f32 to vector<2x64xf32>
    %378 = arith.mulf %376, %377 : vector<2x64xf32>
    %cst_99 = arith.constant 5.000000e-01 : f32
    %379 = vector.broadcast %cst_99 : f32 to vector<2x64xf32>
    %380 = arith.addf %378, %379 : vector<2x64xf32>
    %381 = vector.extract_strided_slice %375 {offsets = [0, 64], sizes = [2, 64], strides = [1, 1]} : vector<2x256xf32> to vector<2x64xf32>
    %cst_100 = arith.constant 5.000000e-01 : f32
    %382 = vector.broadcast %cst_100 : f32 to vector<2x64xf32>
    %383 = arith.mulf %381, %382 : vector<2x64xf32>
    %cst_101 = arith.constant 5.000000e-01 : f32
    %384 = vector.broadcast %cst_101 : f32 to vector<2x64xf32>
    %385 = arith.addf %383, %384 : vector<2x64xf32>
    %386 = vector.extract_strided_slice %375 {offsets = [0, 128], sizes = [2, 64], strides = [1, 1]} : vector<2x256xf32> to vector<2x64xf32>
    %cst_102 = arith.constant 5.000000e-01 : f32
    %387 = vector.broadcast %cst_102 : f32 to vector<2x64xf32>
    %388 = arith.mulf %386, %387 : vector<2x64xf32>
    %cst_103 = arith.constant 5.000000e-01 : f32
    %389 = vector.broadcast %cst_103 : f32 to vector<2x64xf32>
    %390 = arith.addf %388, %389 : vector<2x64xf32>
    %391 = vector.extract_strided_slice %375 {offsets = [0, 192], sizes = [2, 64], strides = [1, 1]} : vector<2x256xf32> to vector<2x64xf32>
    %392 = arith.mulf %385, %368 : vector<2x64xf32>
    %393 = arith.mulf %380, %391 : vector<2x64xf32>
    %394 = arith.addf %392, %393 : vector<2x64xf32>
    %395 = math.tanh %394 : vector<2x64xf32>
    %396 = arith.mulf %390, %395 : vector<2x64xf32>
    %397 = arith.truncf %396 : vector<2x64xf32> to vector<2x64xbf16>
    %cst_104 = arith.constant dense<0.000000e+00> : vector<2x256xf32>
    %398 = tpu.matmul %397, %8, %cst_104 {dimension_numbers = #tpu.dot_dimension_numbers<[1], [0], [0], [1], [0, 0, 1, 1], [], []>} : vector<2x64xbf16>, vector<64x256xbf16>, vector<2x256xf32> -> vector<2x256xf32>
    %399 = vector.extract_strided_slice %24 {offsets = [28, 0], sizes = [2, 256], strides = [1, 1]} : vector<32x256xf32> to vector<2x256xf32>
    %400 = arith.addf %398, %399 : vector<2x256xf32>
    %401 = math.tanh %400 : vector<2x256xf32>
    %402 = vector.extract_strided_slice %401 {offsets = [0, 0], sizes = [2, 64], strides = [1, 1]} : vector<2x256xf32> to vector<2x64xf32>
    %cst_105 = arith.constant 5.000000e-01 : f32
    %403 = vector.broadcast %cst_105 : f32 to vector<2x64xf32>
    %404 = arith.mulf %402, %403 : vector<2x64xf32>
    %cst_106 = arith.constant 5.000000e-01 : f32
    %405 = vector.broadcast %cst_106 : f32 to vector<2x64xf32>
    %406 = arith.addf %404, %405 : vector<2x64xf32>
    %407 = vector.extract_strided_slice %401 {offsets = [0, 64], sizes = [2, 64], strides = [1, 1]} : vector<2x256xf32> to vector<2x64xf32>
    %cst_107 = arith.constant 5.000000e-01 : f32
    %408 = vector.broadcast %cst_107 : f32 to vector<2x64xf32>
    %409 = arith.mulf %407, %408 : vector<2x64xf32>
    %cst_108 = arith.constant 5.000000e-01 : f32
    %410 = vector.broadcast %cst_108 : f32 to vector<2x64xf32>
    %411 = arith.addf %409, %410 : vector<2x64xf32>
    %412 = vector.extract_strided_slice %401 {offsets = [0, 128], sizes = [2, 64], strides = [1, 1]} : vector<2x256xf32> to vector<2x64xf32>
    %cst_109 = arith.constant 5.000000e-01 : f32
    %413 = vector.broadcast %cst_109 : f32 to vector<2x64xf32>
    %414 = arith.mulf %412, %413 : vector<2x64xf32>
    %cst_110 = arith.constant 5.000000e-01 : f32
    %415 = vector.broadcast %cst_110 : f32 to vector<2x64xf32>
    %416 = arith.addf %414, %415 : vector<2x64xf32>
    %417 = vector.extract_strided_slice %401 {offsets = [0, 192], sizes = [2, 64], strides = [1, 1]} : vector<2x256xf32> to vector<2x64xf32>
    %418 = arith.mulf %411, %394 : vector<2x64xf32>
    %419 = arith.mulf %406, %417 : vector<2x64xf32>
    %420 = arith.addf %418, %419 : vector<2x64xf32>
    %421 = math.tanh %420 : vector<2x64xf32>
    %422 = arith.mulf %416, %421 : vector<2x64xf32>
    %423 = arith.truncf %422 : vector<2x64xf32> to vector<2x64xbf16>
    %cst_111 = arith.constant dense<0.000000e+00> : vector<2x256xf32>
    %424 = tpu.matmul %423, %8, %cst_111 {dimension_numbers = #tpu.dot_dimension_numbers<[1], [0], [0], [1], [0, 0, 1, 1], [], []>} : vector<2x64xbf16>, vector<64x256xbf16>, vector<2x256xf32> -> vector<2x256xf32>
    %425 = vector.extract_strided_slice %24 {offsets = [30, 0], sizes = [2, 256], strides = [1, 1]} : vector<32x256xf32> to vector<2x256xf32>
    %426 = arith.addf %424, %425 : vector<2x256xf32>
    %427 = math.tanh %426 : vector<2x256xf32>
    %428 = vector.extract_strided_slice %427 {offsets = [0, 0], sizes = [2, 64], strides = [1, 1]} : vector<2x256xf32> to vector<2x64xf32>
    %cst_112 = arith.constant 5.000000e-01 : f32
    %429 = vector.broadcast %cst_112 : f32 to vector<2x64xf32>
    %430 = arith.mulf %428, %429 : vector<2x64xf32>
    %cst_113 = arith.constant 5.000000e-01 : f32
    %431 = vector.broadcast %cst_113 : f32 to vector<2x64xf32>
    %432 = arith.addf %430, %431 : vector<2x64xf32>
    %433 = vector.extract_strided_slice %427 {offsets = [0, 64], sizes = [2, 64], strides = [1, 1]} : vector<2x256xf32> to vector<2x64xf32>
    %cst_114 = arith.constant 5.000000e-01 : f32
    %434 = vector.broadcast %cst_114 : f32 to vector<2x64xf32>
    %435 = arith.mulf %433, %434 : vector<2x64xf32>
    %cst_115 = arith.constant 5.000000e-01 : f32
    %436 = vector.broadcast %cst_115 : f32 to vector<2x64xf32>
    %437 = arith.addf %435, %436 : vector<2x64xf32>
    %438 = vector.extract_strided_slice %427 {offsets = [0, 128], sizes = [2, 64], strides = [1, 1]} : vector<2x256xf32> to vector<2x64xf32>
    %cst_116 = arith.constant 5.000000e-01 : f32
    %439 = vector.broadcast %cst_116 : f32 to vector<2x64xf32>
    %440 = arith.mulf %438, %439 : vector<2x64xf32>
    %cst_117 = arith.constant 5.000000e-01 : f32
    %441 = vector.broadcast %cst_117 : f32 to vector<2x64xf32>
    %442 = arith.addf %440, %441 : vector<2x64xf32>
    %443 = vector.extract_strided_slice %427 {offsets = [0, 192], sizes = [2, 64], strides = [1, 1]} : vector<2x256xf32> to vector<2x64xf32>
    %444 = arith.mulf %437, %420 : vector<2x64xf32>
    %445 = arith.mulf %432, %443 : vector<2x64xf32>
    %446 = arith.addf %444, %445 : vector<2x64xf32>
    %447 = math.tanh %446 : vector<2x64xf32>
    %448 = arith.mulf %442, %447 : vector<2x64xf32>
    %449 = arith.truncf %448 : vector<2x64xf32> to vector<2x64xbf16>
    %cst_118 = arith.constant dense<0.000000e+00> : vector<2x256xf32>
    %450 = tpu.matmul %449, %8, %cst_118 {dimension_numbers = #tpu.dot_dimension_numbers<[1], [0], [0], [1], [0, 0, 1, 1], [], []>} : vector<2x64xbf16>, vector<64x256xbf16>, vector<2x256xf32> -> vector<2x256xf32>
    %451 = vector.broadcast %13 : vector<1x256xf32> to vector<2x256xf32>
    %452 = arith.addf %450, %451 : vector<2x256xf32>
    %453 = math.tanh %452 : vector<2x256xf32>
    %454 = vector.extract_strided_slice %453 {offsets = [0, 0], sizes = [2, 64], strides = [1, 1]} : vector<2x256xf32> to vector<2x64xf32>
    %cst_119 = arith.constant 5.000000e-01 : f32
    %455 = vector.broadcast %cst_119 : f32 to vector<2x64xf32>
    %456 = arith.mulf %454, %455 : vector<2x64xf32>
    %cst_120 = arith.constant 5.000000e-01 : f32
    %457 = vector.broadcast %cst_120 : f32 to vector<2x64xf32>
    %458 = arith.addf %456, %457 : vector<2x64xf32>
    %459 = vector.extract_strided_slice %453 {offsets = [0, 64], sizes = [2, 64], strides = [1, 1]} : vector<2x256xf32> to vector<2x64xf32>
    %cst_121 = arith.constant 5.000000e-01 : f32
    %460 = vector.broadcast %cst_121 : f32 to vector<2x64xf32>
    %461 = arith.mulf %459, %460 : vector<2x64xf32>
    %cst_122 = arith.constant 5.000000e-01 : f32
    %462 = vector.broadcast %cst_122 : f32 to vector<2x64xf32>
    %463 = arith.addf %461, %462 : vector<2x64xf32>
    %464 = vector.extract_strided_slice %453 {offsets = [0, 128], sizes = [2, 64], strides = [1, 1]} : vector<2x256xf32> to vector<2x64xf32>
    %cst_123 = arith.constant 5.000000e-01 : f32
    %465 = vector.broadcast %cst_123 : f32 to vector<2x64xf32>
    %466 = arith.mulf %464, %465 : vector<2x64xf32>
    %cst_124 = arith.constant 5.000000e-01 : f32
    %467 = vector.broadcast %cst_124 : f32 to vector<2x64xf32>
    %468 = arith.addf %466, %467 : vector<2x64xf32>
    %469 = vector.extract_strided_slice %453 {offsets = [0, 192], sizes = [2, 64], strides = [1, 1]} : vector<2x256xf32> to vector<2x64xf32>
    %470 = arith.mulf %463, %446 : vector<2x64xf32>
    %471 = arith.mulf %458, %469 : vector<2x64xf32>
    %472 = arith.addf %470, %471 : vector<2x64xf32>
    %473 = math.tanh %472 : vector<2x64xf32>
    %474 = arith.mulf %468, %473 : vector<2x64xf32>
    %475 = arith.truncf %474 : vector<2x64xf32> to vector<2x64xbf16>
    %cst_125 = arith.constant dense<0.000000e+00> : vector<2x8xf32>
    %476 = tpu.matmul %475, %9, %cst_125 {dimension_numbers = #tpu.dot_dimension_numbers<[1], [0], [0], [1], [0, 0, 1, 1], [], []>} : vector<2x64xbf16>, vector<64x8xbf16>, vector<2x8xf32> -> vector<2x8xf32>
    %477 = vector.broadcast %15 : vector<1x8xf32> to vector<2x8xf32>
    %478 = arith.addf %476, %477 : vector<2x8xf32>
    %c0_126 = arith.constant 0 : index
    %c0_127 = arith.constant 0 : index
    %479 = vector.load %arg3[%c0_126, %c0_127] : memref<2x8xf32, #tpu.memory_space<vmem>>, vector<2x8xf32>
    tpu.vector_store %arg3[%c0_126, %c0_127], %478 {strides = array<i32>} : memref<2x8xf32, #tpu.memory_space<vmem>>, vector<2x8xf32>,
    return
  }
}

</mosaic_0001>

<bundles_post_ra>
// kernel: lstm_model_forward.1
= control target key start
LH: loop header
LB: loop body
LE: loop exit
PB: predicated region body
PF: predicated region fallthrough
CT: control target
= control target key end

     0   :  { %vm20_vm0 = vcmask 15360   ;;  %s1824_s0 = inlined_call_operand.vmem [shape: f32[32,4], index: 0, kind: input, shape index: {}]   ;;  %s1825_s1 = inlined_call_operand.vmem [shape: bf16[64,384], index: 1, kind: input, shape index: {}]   ;;  %s1826_s2 = inlined_call_operand.vmem [shape: f32[5,256], index: 2, kind: input, shape index: {}]   ;;  %s1827_s3 = inlined_call_operand.hbm [shape: f32[2,8], index: 3, kind: output, shape index: {}]  }
   0x1   :  { %v16_v0 = vld [vmem:[%s1824_s0] sm:$0xff] }
   0x2   :  { %v21_v1 = vsel %vm20_vm0, %v16_v0, -inf }
   0x3   :  { %22 = vmax.xlane.f32.xlu0 %v21_v1 }
   0x4   :  { %8 = vsyncpa [#allocation3], 0  ;;  %vm33_vm1 = vcmask 31760   ;;  %v1388_v4 = vld [vmem:[%s1826_s2 + $0x8] sm:$0x1f]  ;;  %s1358_s16 = smov 64  }
   0x5   :  { %v34_v2 = vsel %vm33_vm1, %v16_v0, -inf  ;;  %v1391_v5 = vperm.slane %v1388_v4, 0  ;;  %v1394_v6 = vperm.slane %v1388_v4, 1  ;;  %v103_v9 = vperm.slane %v1388_v4, 3  ;;  %v1409_v14 = vld [vmem:[%s1826_s2] sm:$0x1f] }
   0x6   :  { %v1412_v15 = vperm.slane %v1409_v14, 1  ;;  %v1415_v16 = vperm.slane %v1409_v14, 0  ;;  %v102_v20 = vperm.slane %v1409_v14, 3  ;;  %v1160_v27 = vld [vmem:[%s1825_s1 + $0x48] sm:$0xf]  ;;  %vm176_vm2 = vcmask 523264  }
   0x7   :  { %v1225_v28 = vld [vmem:[%s1825_s1 + $0x50] sm:$0xf0]  ;;  %v1224_v29 = vld [vmem:[%s1825_s1 + $0x4c] sm:$0xf]  ;;  %v1162_v31 = vld [vmem:[%s1825_s1 + $0x54] sm:$0xf0] }
   0x8   :  { %v1433_v30 = vor.u32 %v1225_v28, %v1160_v27  ;;  %v1152_v32 = vld [vmem:[%s1825_s1 + $0x30] sm:$0xf]  ;;  %v1222_v33 = vld [vmem:[%s1825_s1 + $0x38] sm:$0xf0]  ;;  %v1444_v34 = vor.u32 %v1224_v29, %v1162_v31  ;;  %v1221_v35 = vld [vmem:[%s1825_s1 + $0x34] sm:$0xf] }
   0x9   :  { %v1154_v36 = vld [vmem:[%s1825_s1 + $0x3c] sm:$0xf0]  ;;  %v1453_v37 = vor.u32 %v1222_v33, %v1152_v32  ;;  %v1144_v39 = vld [vmem:[%s1825_s1 + $0x18] sm:$0xf]  ;;  %v1219_v40 = vld [vmem:[%s1825_s1 + $0x20] sm:$0xf0] }
   0xa   :  { %184 = vmatpush.bf16.msra.mxu0 %v1433_v30  ;;  %241 = vmatpush.bf16.msra.mxu2 %v1433_v30  ;;  %v1457_v38 = vor.u32 %v1221_v35, %v1154_v36  ;;  %v1218_v41 = vld [vmem:[%s1825_s1 + $0x1c] sm:$0xf]  ;;  %v1146_v42 = vld [vmem:[%s1825_s1 + $0x24] sm:$0xf0]  ;;  %v1473_v43 = vor.u32 %v1219_v40, %v1144_v39  ;;  %v1136_v49 = vld [vmem:[%s1825_s1] sm:$0xf] }
   0xb   :  { %35 = vmax.xlane.f32.xlu0 %v34_v2  ;;  %197 = vmatpush.bf16.msra.mxu1 %v1444_v34  ;;  %v1477_v44 = vor.u32 %v1218_v41, %v1146_v42  ;;  %v1216_v50 = vld [vmem:[%s1825_s1 + $0x8] sm:$0xf0]  ;;  %v1215_v51 = vld [vmem:[%s1825_s1 + $0x4] sm:$0xf]  ;;  %v1138_v53 = vld [vmem:[%s1825_s1 + $0xc] sm:$0xf0] }
   0xc   :  { %254 = vmatpush.bf16.msra.mxu3 %v1444_v34  ;;  %v1497_v52 = vor.u32 %v1216_v50, %v1136_v49  ;;  %v1502_v54 = vor.u32 %v1215_v51, %v1138_v53  ;;  %v1536_v60 = vperm.slane %v1388_v4, 2  ;;  %v1539_v61 = vperm.slane %v1409_v14, 2 }
   0xd   :  { %vm1116_vm3 = vcmask 58368  }
   0xe   :  { %185 = vmatpush.bf16.msra.mxu0 %v1453_v37  ;;  %242 = vmatpush.bf16.msra.mxu2 %v1453_v37 }
   0xf   :  { %198 = vmatpush.bf16.msra.mxu1 %v1457_v38 }
  0x10   :  { %255 = vmatpush.bf16.msra.mxu3 %v1457_v38 }
  0x12   :  { %186 = vmatpush.bf16.msra.mxu0 %v1473_v43  ;;  %243 = vmatpush.bf16.msra.mxu2 %v1473_v43 }
  0x13   :  { %199 = vmatpush.bf16.msra.mxu1 %v1477_v44 }
  0x14   :  { %256 = vmatpush.bf16.msra.mxu3 %v1477_v44 }
  0x16   :  { %187 = vmatpush.bf16.msra.mxu0 %v1497_v52  ;;  %244 = vmatpush.bf16.msra.mxu2 %v1497_v52 }
  0x17   :  { %200 = vmatpush.bf16.msra.mxu1 %v1502_v54 }
  0x18   :  { %257 = vmatpush.bf16.msra.mxu3 %v1502_v54 }
  0x1a   :  { %298 = vmatpush.bf16.msrb.mxu0 %v1433_v30  ;;  %351 = vmatpush.bf16.msrb.mxu2 %v1433_v30 }
  0x1b   :  { %311 = vmatpush.bf16.msrb.mxu1 %v1444_v34 }
  0x1c   :  { %364 = vmatpush.bf16.msrb.mxu3 %v1444_v34 }
  0x1e   :  { %299 = vmatpush.bf16.msrb.mxu0 %v1453_v37  ;;  %352 = vmatpush.bf16.msrb.mxu2 %v1453_v37 }
  0x1f   :  { %312 = vmatpush.bf16.msrb.mxu1 %v1457_v38 }
  0x20   :  { %365 = vmatpush.bf16.msrb.mxu3 %v1457_v38 }
  0x22   :  { %300 = vmatpush.bf16.msrb.mxu0 %v1473_v43  ;;  %353 = vmatpush.bf16.msrb.mxu2 %v1473_v43 }
  0x23   :  { %313 = vmatpush.bf16.msrb.mxu1 %v1477_v44 }
  0x24   :  { %366 = vmatpush.bf16.msrb.mxu3 %v1477_v44 }
  0x26   :  { %301 = vmatpush.bf16.msrb.mxu0 %v1497_v52  ;;  %354 = vmatpush.bf16.msrb.mxu2 %v1497_v52 }
  0x27   :  { %314 = vmatpush.bf16.msrb.mxu1 %v1502_v54 }
  0x28   :  { %367 = vmatpush.bf16.msrb.mxu3 %v1502_v54 }
  0x76   :  { %v23_v3 = vpop.xlane.xlu0 %22 }
  0x77   :  { %v67_v8 = vmul.f32 %v1391_v5, %v23_v3  ;;  %v66_v18 = vmul.f32 %v1415_v16, %v23_v3 }
  0x7e   :  { %v36_v7 = vpop.xlane.xlu0 %35 }
  0x7f   :  { %v77_v10 = vmul.f32 %v1394_v6, %v36_v7  ;;  %v76_v17 = vmul.f32 %v1412_v15, %v36_v7 }
  0x81   :  { %v1399_v11 = vadd.f32 %v77_v10, %v67_v8  ;;  %v1419_v19 = vadd.f32 %v76_v17, %v66_v18 }
  0x83   :  { %v105_v12 = vadd.f32 %v103_v9, %v1399_v11  ;;  %v104_v21 = vadd.f32 %v102_v20, %v1419_v19  ;;  %v1543_v62 = vadd.f32 %v1539_v61, %v1419_v19  ;;  %v1547_v63 = vadd.f32 %v1536_v60, %v1399_v11 }
  0x85   :  { %1229 = vtanh.f32 %v105_v12  ;;  %v172_v0 = vrot.slane %v1543_v62, 2  ;;  %v173_v1 = vrot.slane %v1547_v63, 2  ;;  %v230_v27 = vrot.slane %v1543_v62, 4 }
  0x86   :  { %1231 = vtanh.f32 %v104_v21  ;;  %v231_v28 = vrot.slane %v1547_v63, 4 }
  0x8b   :  { %v1402_v13 = vpop.eup %1229 }
  0x8c   :  { %114 = vrot.lane.b32.xlu1 %v1402_v13, %s1358_s16  ;;  %v1232_v22 = vpop.eup %1231  ;;  %v110_v55 = vmul.f32 0.5, %v1402_v13 }
  0x8d   :  { %v108_v23 = vmul.f32 0.5, %v1232_v22 }
  0x8e   :  { %v111_v56 = vadd.f32 0.5, %v110_v55 }
  0x8f   :  { %v109_v24 = vadd.f32 0.5, %v108_v23 }
  0x91   :  { %v112_v45 = vmul.f32 0.0, %v109_v24 }
  0xfe   :  { %v115_v25 = vpop.permute.xlu1 %114 }
  0xff   :  { %v117_v26 = vmul.f32 %v115_v25, %v109_v24 }
 0x101   :  { %119 = vrot.lane.b32.xlu1 %v117_v26, %s1358_s16 }
 0x173   :  { %v120_v46 = vpop.permute.xlu1 %119 }
 0x174   :  { %v1484_v47 = vadd.f32 %v120_v46, %v112_v45 }
 0x176   :  { %1233 = vtanh.f32 %v1484_v47 }
 0x17c   :  { %v1234_v48 = vpop.eup %1233 }
 0x17d   :  { %125 = vrot.lane.b32.xlu2 %v1234_v48, %s1358_s16 }
 0x1d7   :  { %v126_v57 = vpop.permute.xlu2 %125 }
 0x1d8   :  { %v128_v58 = vmul.f32 %v126_v57, %v111_v56 }
 0x1da   :  { %v129_v59 = vpack.c.bf16 %v128_v58, %v128_v58  ;;  %v287_v58 = vrot.slane %v1543_v62, 6 }
 0x1dc   :  { %1166 = vmatmul.msk.bf16.vlgmr.msra.gmra.mxu0 %vm176_vm2, %v129_v59  ;;  %1167 = vmatmul.msk.bf16.vlgmr.msra.gmra.mxu1 %vm176_vm2, %v129_v59  ;;  %v288_v59 = vrot.slane %v1547_v63, 6 }
 0x1dd   :  { %423 = vmatpush.bf16.msra.mxu1 %v1444_v34  ;;  %410 = vmatpush.bf16.msra.mxu0 %v1433_v30 }
 0x1e1   :  { %424 = vmatpush.bf16.msra.mxu1 %v1457_v38  ;;  %411 = vmatpush.bf16.msra.mxu0 %v1453_v37 }
 0x1e5   :  { %425 = vmatpush.bf16.msra.mxu1 %v1477_v44  ;;  %412 = vmatpush.bf16.msra.mxu0 %v1473_v43 }
 0x1e9   :  { %426 = vmatpush.bf16.msra.mxu1 %v1502_v54  ;;  %413 = vmatpush.bf16.msra.mxu0 %v1497_v52 }
 0x259   :  { %v189_v2 = vpop.f32.mrf.mxu0  ;;  %v202_v3 = vpop.f32.mrf.mxu1 }
 0x25a   :  { %v190_v7 = vadd.f32 %v189_v2, %v172_v0  ;;  %v203_v4 = vadd.f32 %v202_v3, %v173_v1 }
 0x25c   :  { %1235 = vtanh.f32 %v203_v4 }
 0x25d   :  { %1237 = vtanh.f32 %v190_v7 }
 0x261   :  { %v191_v8 = vpop.f32.mrf.mxu0  ;;  %v204_v9 = vpop.f32.mrf.mxu1 }
 0x262   :  { %v1236_v10 = vpop.eup %1235 }
 0x263   :  { %214 = vrot.lane.b32.xlu2 %v1236_v10, %s1358_s16  ;;  %v1238_v12 = vpop.eup %1237  ;;  %v210_v22 = vmul.f32 0.5, %v1236_v10 }
 0x264   :  { %v208_v13 = vmul.f32 0.5, %v1238_v12 }
 0x265   :  { %v211_v23 = vadd.f32 0.5, %v210_v22 }
 0x266   :  { %v209_v14 = vadd.f32 0.5, %v208_v13 }
 0x268   :  { %v212_v18 = vmul.f32 %v209_v14, %v1484_v47 }
 0x2bd   :  { %v215_v11 = vpop.permute.xlu2 %214 }
 0x2be   :  { %v217_v17 = vmul.f32 %v215_v11, %v209_v14 }
 0x2c0   :  { %219 = vrot.lane.b32.xlu0 %v217_v17, %s1358_s16 }
 0x332   :  { %v220_v19 = vpop.permute.xlu0 %219 }
 0x333   :  { %v222_v20 = vadd.f32 %v220_v19, %v212_v18  ;;  %v17_v18 = vld [vmem:[%s1824_s0 + $0x8] sm:$0xff] }
 0x334   :  { %v24_v19 = vsel %vm20_vm0, %v17_v18, -inf }
 0x335   :  { %1239 = vtanh.f32 %v222_v20 }
 0x33b   :  { %v1240_v21 = vpop.eup %1239 }
 0x33c   :  { %225 = vrot.lane.b32.xlu1 %v1240_v21, %s1358_s16 }
 0x3ae   :  { %v226_v24 = vpop.permute.xlu1 %225 }
 0x3af   :  { %v228_v25 = vmul.f32 %v226_v24, %v211_v23 }
 0x3b1   :  { %v229_v26 = vpack.c.bf16 %v228_v25, %v228_v25 }
 0x3b3   :  { %1168 = vmatmul.msk.bf16.vlgmr.msra.gmra.mxu2 %vm176_vm2, %v229_v26  ;;  %1169 = vmatmul.msk.bf16.vlgmr.msra.gmra.mxu3 %vm176_vm2, %v229_v26 }
 0x3b4   :  { %480 = vmatpush.bf16.msra.mxu3 %v1444_v34  ;;  %467 = vmatpush.bf16.msra.mxu2 %v1433_v30 }
 0x3b8   :  { %481 = vmatpush.bf16.msra.mxu3 %v1457_v38  ;;  %468 = vmatpush.bf16.msra.mxu2 %v1453_v37 }
 0x3bc   :  { %482 = vmatpush.bf16.msra.mxu3 %v1477_v44  ;;  %469 = vmatpush.bf16.msra.mxu2 %v1473_v43 }
 0x3c0   :  { %483 = vmatpush.bf16.msra.mxu3 %v1502_v54  ;;  %470 = vmatpush.bf16.msra.mxu2 %v1497_v52 }
 0x436   :  { %v246_v29 = vpop.f32.mrf.mxu2  ;;  %v259_v31 = vpop.f32.mrf.mxu3 }
 0x437   :  { %v247_v32 = vadd.f32 %v246_v29, %v230_v27  ;;  %v260_v33 = vadd.f32 %v259_v31, %v231_v28 }
 0x439   :  { %1241 = vtanh.f32 %v260_v33 }
 0x43a   :  { %1243 = vtanh.f32 %v247_v32 }
 0x43e   :  { %v248_v35 = vpop.f32.mrf.mxu2  ;;  %v261_v36 = vpop.f32.mrf.mxu3 }
 0x43f   :  { %v1242_v39 = vpop.eup %1241 }
 0x440   :  { %271 = vrot.lane.b32.xlu2 %v1242_v39, %s1358_s16  ;;  %v1244_v40 = vpop.eup %1243  ;;  %v267_v51 = vmul.f32 0.5, %v1242_v39 }
 0x441   :  { %v265_v41 = vmul.f32 0.5, %v1244_v40 }
 0x442   :  { %v268_v53 = vadd.f32 0.5, %v267_v51 }
 0x443   :  { %v266_v42 = vadd.f32 0.5, %v265_v41 }
 0x445   :  { %v269_v47 = vmul.f32 %v266_v42, %v222_v20  ;;  %v37_v20 = vsel %vm33_vm1, %v17_v18, -inf }
 0x49a   :  { %v272_v45 = vpop.permute.xlu2 %271 }
 0x49b   :  { %v274_v46 = vmul.f32 %v272_v45, %v266_v42 }
 0x49d   :  { %276 = vrot.lane.b32.xlu1 %v274_v46, %s1358_s16 }
 0x50f   :  { %v277_v48 = vpop.permute.xlu1 %276 }
 0x510   :  { %v279_v49 = vadd.f32 %v277_v48, %v269_v47 }
 0x512   :  { %1245 = vtanh.f32 %v279_v49 }
 0x518   :  { %v1246_v50 = vpop.eup %1245 }
 0x519   :  { %282 = vrot.lane.b32.xlu2 %v1246_v50, %s1358_s16 }
 0x573   :  { %v283_v55 = vpop.permute.xlu2 %282 }
 0x574   :  { %v285_v56 = vmul.f32 %v283_v55, %v268_v53 }
 0x576   :  { %v286_v57 = vpack.c.bf16 %v285_v56, %v285_v56 }
 0x578   :  { %1170 = vmatmul.msk.bf16.vlgmr.msrb.gmra.mxu0 %vm176_vm2, %v286_v57  ;;  %1171 = vmatmul.msk.bf16.vlgmr.msrb.gmra.mxu1 %vm176_vm2, %v286_v57 }
 0x579   :  { %537 = vmatpush.bf16.msrb.mxu1 %v1444_v34  ;;  %524 = vmatpush.bf16.msrb.mxu0 %v1433_v30 }
 0x57d   :  { %538 = vmatpush.bf16.msrb.mxu1 %v1457_v38  ;;  %525 = vmatpush.bf16.msrb.mxu0 %v1453_v37 }
 0x581   :  { %539 = vmatpush.bf16.msrb.mxu1 %v1477_v44  ;;  %526 = vmatpush.bf16.msrb.mxu0 %v1473_v43 }
 0x585   :  { %540 = vmatpush.bf16.msrb.mxu1 %v1502_v54  ;;  %527 = vmatpush.bf16.msrb.mxu0 %v1497_v52 }
 0x5f5   :  { %v303_v0 = vpop.f32.mrf.mxu0  ;;  %v316_v1 = vpop.f32.mrf.mxu1 }
 0x5f6   :  { %v304_v2 = vadd.f32 %v303_v0, %v287_v58  ;;  %v317_v3 = vadd.f32 %v316_v1, %v288_v59 }
 0x5f8   :  { %1247 = vtanh.f32 %v317_v3 }
 0x5f9   :  { %1249 = vtanh.f32 %v304_v2 }
 0x5fd   :  { %v305_v7 = vpop.f32.mrf.mxu0  ;;  %v318_v4 = vpop.f32.mrf.mxu1 }
 0x5fe   :  { %v1248_v8 = vpop.eup %1247 }
 0x5ff   :  { %328 = vrot.lane.b32.xlu1 %v1248_v8, %s1358_s16  ;;  %v1250_v9 = vpop.eup %1249  ;;  %v324_v21 = vmul.f32 0.5, %v1248_v8 }
 0x600   :  { %v322_v10 = vmul.f32 0.5, %v1250_v9 }
 0x601   :  { %v325_v22 = vadd.f32 0.5, %v324_v21 }
 0x602   :  { %v323_v12 = vadd.f32 0.5, %v322_v10 }
 0x604   :  { %v326_v62 = vmul.f32 %v323_v12, %v279_v49 }
 0x629   :  { %25 = vmax.xlane.f32.xlu1 %v24_v19 }
 0x671   :  { %v329_v13 = vpop.permute.xlu1 %328 }
 0x672   :  { %v331_v14 = vmul.f32 %v329_v13, %v323_v12 }
 0x674   :  { %333 = vrot.lane.b32.xlu2 %v331_v14, %s1358_s16 }
 0x69c   :  { %v26_v26 = vpop.xlane.xlu1 %25 }
 0x69d   :  { %38 = vmax.xlane.f32.xlu2 %v37_v20  ;;  %v69_v28 = vmul.f32 %v1391_v5, %v26_v26  ;;  %v68_v42 = vmul.f32 %v1415_v16, %v26_v26 }
 0x6ce   :  { %v334_v63 = vpop.permute.xlu2 %333 }
 0x6cf   :  { %v336_v11 = vadd.f32 %v334_v63, %v326_v62 }
 0x6d1   :  { %1251 = vtanh.f32 %v336_v11 }
 0x6d7   :  { %v1252_v17 = vpop.eup %1251 }
 0x6d8   :  { %339 = vrot.lane.b32.xlu0 %v1252_v17, %s1358_s16 }
 0x710   :  { %v39_v27 = vpop.xlane.xlu2 %38 }
 0x711   :  { %v79_v29 = vmul.f32 %v1394_v6, %v39_v27  ;;  %v78_v45 = vmul.f32 %v1412_v15, %v39_v27 }
 0x713   :  { %v87_v31 = vadd.f32 %v79_v29, %v69_v28  ;;  %v86_v46 = vadd.f32 %v78_v45, %v68_v42 }
 0x715   :  { %v1603_v32 = vadd.f32 %v1536_v60, %v87_v31  ;;  %v1610_v47 = vadd.f32 %v1539_v61, %v86_v46 }
 0x717   :  { %v399_v4 = vrot.slane %v1610_v47, 2  ;;  %v400_v8 = vrot.slane %v1603_v32, 2  ;;  %v456_v31 = vrot.slane %v1610_v47, 4 }
 0x74a   :  { %v340_v23 = vpop.permute.xlu0 %339 }
 0x74b   :  { %v342_v24 = vmul.f32 %v340_v23, %v325_v22 }
 0x74d   :  { %v343_v25 = vpack.c.bf16 %v342_v24, %v342_v24 }
 0x74f   :  { %1172 = vmatmul.msk.bf16.vlgmr.msrb.gmra.mxu2 %vm176_vm2, %v343_v25  ;;  %1173 = vmatmul.msk.bf16.vlgmr.msrb.gmra.mxu3 %vm176_vm2, %v343_v25 }
 0x750   :  { %590 = vmatpush.bf16.msrb.mxu3 %v1444_v34  ;;  %577 = vmatpush.bf16.msrb.mxu2 %v1433_v30 }
 0x754   :  { %591 = vmatpush.bf16.msrb.mxu3 %v1457_v38  ;;  %578 = vmatpush.bf16.msrb.mxu2 %v1453_v37 }
 0x758   :  { %592 = vmatpush.bf16.msrb.mxu3 %v1477_v44  ;;  %579 = vmatpush.bf16.msrb.mxu2 %v1473_v43 }
 0x75c   :  { %593 = vmatpush.bf16.msrb.mxu3 %v1502_v54  ;;  %580 = vmatpush.bf16.msrb.mxu2 %v1497_v52 }
 0x7d2   :  { %v356_v33 = vpop.f32.mrf.mxu2  ;;  %v369_v35 = vpop.f32.mrf.mxu3 }
 0x7d3   :  { %v370_v36 = vadd.f32 %v369_v35, %v1603_v32  ;;  %v357_v48 = vadd.f32 %v356_v33, %v1610_v47  ;;  %v457_v33 = vrot.slane %v1603_v32, 4 }
 0x7d5   :  { %1253 = vtanh.f32 %v370_v36 }
 0x7d6   :  { %1255 = vtanh.f32 %v357_v48 }
 0x7da   :  { %v358_v39 = vpop.f32.mrf.mxu2  ;;  %v371_v40 = vpop.f32.mrf.mxu3 }
 0x7db   :  { %v1254_v41 = vpop.eup %1253 }
 0x7dc   :  { %381 = vrot.lane.b32.xlu0 %v1254_v41, %s1358_s16  ;;  %v1256_v49 = vpop.eup %1255  ;;  %v377_v0 = vmul.f32 0.5, %v1254_v41 }
 0x7dd   :  { %v375_v50 = vmul.f32 0.5, %v1256_v49 }
 0x7de   :  { %v378_v1 = vadd.f32 0.5, %v377_v0 }
 0x7df   :  { %v376_v51 = vadd.f32 0.5, %v375_v50 }
 0x7e1   :  { %v379_v56 = vmul.f32 %v376_v51, %v336_v11 }
 0x84e   :  { %v382_v53 = vpop.permute.xlu0 %381 }
 0x84f   :  { %v384_v55 = vmul.f32 %v382_v53, %v376_v51 }
 0x851   :  { %386 = vrot.lane.b32.xlu0 %v384_v55, %s1358_s16 }
 0x8c3   :  { %v387_v57 = vpop.permute.xlu0 %386 }
 0x8c4   :  { %v389_v58 = vadd.f32 %v387_v57, %v379_v56 }
 0x8c6   :  { %1257 = vtanh.f32 %v389_v58 }
 0x8cc   :  { %v1258_v59 = vpop.eup %1257 }
 0x8cd   :  { %392 = vrot.lane.b32.xlu0 %v1258_v59, %s1358_s16 }
 0x93f   :  { %v393_v2 = vpop.permute.xlu0 %392 }
 0x940   :  { %v395_v3 = vmul.f32 %v393_v2, %v378_v1 }
 0x942   :  { %v396_v7 = vpack.c.bf16 %v395_v3, %v395_v3  ;;  %v513_v3 = vrot.slane %v1610_v47, 6 }
 0x944   :  { %1174 = vmatmul.msk.bf16.vlgmr.msra.gmra.mxu0 %vm176_vm2, %v396_v7  ;;  %1175 = vmatmul.msk.bf16.vlgmr.msra.gmra.mxu1 %vm176_vm2, %v396_v7  ;;  %v514_v7 = vrot.slane %v1603_v32, 6 }
 0x945   :  { %649 = vmatpush.bf16.msra.mxu1 %v1444_v34  ;;  %636 = vmatpush.bf16.msra.mxu0 %v1433_v30 }
 0x949   :  { %650 = vmatpush.bf16.msra.mxu1 %v1457_v38  ;;  %637 = vmatpush.bf16.msra.mxu0 %v1453_v37 }
 0x94d   :  { %651 = vmatpush.bf16.msra.mxu1 %v1477_v44  ;;  %638 = vmatpush.bf16.msra.mxu0 %v1473_v43 }
 0x951   :  { %652 = vmatpush.bf16.msra.mxu1 %v1502_v54  ;;  %639 = vmatpush.bf16.msra.mxu0 %v1497_v52 }
 0x9c1   :  { %v415_v9 = vpop.f32.mrf.mxu0  ;;  %v428_v10 = vpop.f32.mrf.mxu1 }
 0x9c2   :  { %v416_v12 = vadd.f32 %v415_v9, %v399_v4  ;;  %v429_v13 = vadd.f32 %v428_v10, %v400_v8 }
 0x9c4   :  { %1259 = vtanh.f32 %v429_v13 }
 0x9c5   :  { %1261 = vtanh.f32 %v416_v12 }
 0x9c9   :  { %v417_v14 = vpop.f32.mrf.mxu0  ;;  %v430_v62 = vpop.f32.mrf.mxu1 }
 0x9ca   :  { %v1260_v63 = vpop.eup %1259 }
 0x9cb   :  { %440 = vrot.lane.b32.xlu0 %v1260_v63, %s1358_s16  ;;  %v1262_v11 = vpop.eup %1261  ;;  %v436_v25 = vmul.f32 0.5, %v1260_v63 }
 0x9cc   :  { %v434_v17 = vmul.f32 0.5, %v1262_v11 }
 0x9cd   :  { %v437_v26 = vadd.f32 0.5, %v436_v25 }
 0x9ce   :  { %v435_v18 = vadd.f32 0.5, %v434_v17 }
 0x9d0   :  { %v438_v21 = vmul.f32 %v435_v18, %v389_v58 }
 0xa3d   :  { %v441_v19 = vpop.permute.xlu0 %440 }
 0xa3e   :  { %v443_v20 = vmul.f32 %v441_v19, %v435_v18 }
 0xa40   :  { %445 = vrot.lane.b32.xlu0 %v443_v20, %s1358_s16 }
 0xab2   :  { %v446_v22 = vpop.permute.xlu0 %445 }
 0xab3   :  { %v448_v23 = vadd.f32 %v446_v22, %v438_v21  ;;  %v18_v21 = vld [vmem:[%s1824_s0 + $0x10] sm:$0xff] }
 0xab4   :  { %v27_v22 = vsel %vm20_vm0, %v18_v21, -inf }
 0xab5   :  { %1263 = vtanh.f32 %v448_v23 }
 0xabb   :  { %v1264_v24 = vpop.eup %1263 }
 0xabc   :  { %451 = vrot.lane.b32.xlu2 %v1264_v24, %s1358_s16 }
 0xb16   :  { %v452_v27 = vpop.permute.xlu2 %451 }
 0xb17   :  { %v454_v28 = vmul.f32 %v452_v27, %v437_v26 }
 0xb19   :  { %v455_v29 = vpack.c.bf16 %v454_v28, %v454_v28 }
 0xb1b   :  { %1176 = vmatmul.msk.bf16.vlgmr.msra.gmra.mxu2 %vm176_vm2, %v455_v29  ;;  %1177 = vmatmul.msk.bf16.vlgmr.msra.gmra.mxu3 %vm176_vm2, %v455_v29 }
 0xb1c   :  { %706 = vmatpush.bf16.msra.mxu3 %v1444_v34  ;;  %693 = vmatpush.bf16.msra.mxu2 %v1433_v30 }
 0xb20   :  { %707 = vmatpush.bf16.msra.mxu3 %v1457_v38  ;;  %694 = vmatpush.bf16.msra.mxu2 %v1453_v37 }
 0xb24   :  { %708 = vmatpush.bf16.msra.mxu3 %v1477_v44  ;;  %695 = vmatpush.bf16.msra.mxu2 %v1473_v43 }
 0xb28   :  { %709 = vmatpush.bf16.msra.mxu3 %v1502_v54  ;;  %696 = vmatpush.bf16.msra.mxu2 %v1497_v52 }
 0xb9e   :  { %v472_v35 = vpop.f32.mrf.mxu2  ;;  %v485_v36 = vpop.f32.mrf.mxu3 }
 0xb9f   :  { %v473_v39 = vadd.f32 %v472_v35, %v456_v31  ;;  %v486_v40 = vadd.f32 %v485_v36, %v457_v33 }
 0xba1   :  { %1265 = vtanh.f32 %v486_v40 }
 0xba2   :  { %1267 = vtanh.f32 %v473_v39 }
 0xba6   :  { %v474_v41 = vpop.f32.mrf.mxu2  ;;  %v487_v42 = vpop.f32.mrf.mxu3 }
 0xba7   :  { %v1266_v45 = vpop.eup %1265 }
 0xba8   :  { %497 = vrot.lane.b32.xlu1 %v1266_v45, %s1358_s16  ;;  %v1268_v46 = vpop.eup %1267  ;;  %v493_v58 = vmul.f32 0.5, %v1266_v45 }
 0xba9   :  { %v491_v48 = vmul.f32 0.5, %v1268_v46 }
 0xbaa   :  { %v494_v59 = vadd.f32 0.5, %v493_v58 }
 0xbab   :  { %v492_v49 = vadd.f32 0.5, %v491_v48 }
 0xbad   :  { %v495_v53 = vmul.f32 %v492_v49, %v448_v23  ;;  %v40_v23 = vsel %vm33_vm1, %v18_v21, -inf }
 0xc1a   :  { %v498_v50 = vpop.permute.xlu1 %497 }
 0xc1b   :  { %v500_v51 = vmul.f32 %v498_v50, %v492_v49 }
 0xc1d   :  { %502 = vrot.lane.b32.xlu0 %v500_v51, %s1358_s16 }
 0xc8f   :  { %v503_v55 = vpop.permute.xlu0 %502 }
 0xc90   :  { %v505_v56 = vadd.f32 %v503_v55, %v495_v53 }
 0xc92   :  { %1269 = vtanh.f32 %v505_v56 }
 0xc98   :  { %v1270_v57 = vpop.eup %1269 }
 0xc99   :  { %508 = vrot.lane.b32.xlu0 %v1270_v57, %s1358_s16 }
 0xd0b   :  { %v509_v0 = vpop.permute.xlu0 %508 }
 0xd0c   :  { %v511_v1 = vmul.f32 %v509_v0, %v494_v59 }
 0xd0e   :  { %v512_v2 = vpack.c.bf16 %v511_v1, %v511_v1 }
 0xd10   :  { %1178 = vmatmul.msk.bf16.vlgmr.msrb.gmra.mxu0 %vm176_vm2, %v512_v2  ;;  %1179 = vmatmul.msk.bf16.vlgmr.msrb.gmra.mxu1 %vm176_vm2, %v512_v2 }
 0xd11   :  { %763 = vmatpush.bf16.msrb.mxu1 %v1444_v34  ;;  %750 = vmatpush.bf16.msrb.mxu0 %v1433_v30 }
 0xd15   :  { %764 = vmatpush.bf16.msrb.mxu1 %v1457_v38  ;;  %751 = vmatpush.bf16.msrb.mxu0 %v1453_v37 }
 0xd19   :  { %765 = vmatpush.bf16.msrb.mxu1 %v1477_v44  ;;  %752 = vmatpush.bf16.msrb.mxu0 %v1473_v43 }
 0xd1d   :  { %766 = vmatpush.bf16.msrb.mxu1 %v1502_v54  ;;  %753 = vmatpush.bf16.msrb.mxu0 %v1497_v52 }
 0xd8d   :  { %v529_v4 = vpop.f32.mrf.mxu0  ;;  %v542_v8 = vpop.f32.mrf.mxu1 }
 0xd8e   :  { %v530_v9 = vadd.f32 %v529_v4, %v513_v3  ;;  %v543_v10 = vadd.f32 %v542_v8, %v514_v7 }
 0xd90   :  { %1271 = vtanh.f32 %v543_v10 }
 0xd91   :  { %1273 = vtanh.f32 %v530_v9 }
 0xd95   :  { %v531_v12 = vpop.f32.mrf.mxu0  ;;  %v544_v13 = vpop.f32.mrf.mxu1 }
 0xd96   :  { %v1272_v14 = vpop.eup %1271 }
 0xd97   :  { %554 = vrot.lane.b32.xlu0 %v1272_v14, %s1358_s16  ;;  %v1274_v62 = vpop.eup %1273  ;;  %v550_v24 = vmul.f32 0.5, %v1272_v14 }
 0xd98   :  { %v548_v63 = vmul.f32 0.5, %v1274_v62 }
 0xd99   :  { %v551_v25 = vadd.f32 0.5, %v550_v24 }
 0xd9a   :  { %v549_v11 = vadd.f32 0.5, %v548_v63 }
 0xd9c   :  { %v552_v47 = vmul.f32 %v549_v11, %v505_v56 }
 0xdc1   :  { %28 = vmax.xlane.f32.xlu0 %v27_v22 }
 0xe09   :  { %v555_v17 = vpop.permute.xlu0 %554 }
 0xe0a   :  { %v557_v18 = vmul.f32 %v555_v17, %v549_v11 }
 0xe0c   :  { %559 = vrot.lane.b32.xlu2 %v557_v18, %s1358_s16 }
 0xe34   :  { %v29_v29 = vpop.xlane.xlu0 %28 }
 0xe35   :  { %41 = vmax.xlane.f32.xlu2 %v40_v23  ;;  %v71_v33 = vmul.f32 %v1391_v5, %v29_v29  ;;  %v70_v49 = vmul.f32 %v1415_v16, %v29_v29 }
 0xe66   :  { %v560_v32 = vpop.permute.xlu2 %559 }
 0xe67   :  { %v562_v19 = vadd.f32 %v560_v32, %v552_v47 }
 0xe69   :  { %1275 = vtanh.f32 %v562_v19 }
 0xe6f   :  { %v1276_v20 = vpop.eup %1275 }
 0xe70   :  { %565 = vrot.lane.b32.xlu1 %v1276_v20, %s1358_s16 }
 0xea8   :  { %v42_v31 = vpop.xlane.xlu2 %41 }
 0xea9   :  { %v81_v35 = vmul.f32 %v1394_v6, %v42_v31  ;;  %v80_v50 = vmul.f32 %v1412_v15, %v42_v31 }
 0xeab   :  { %v89_v36 = vadd.f32 %v81_v35, %v71_v33  ;;  %v88_v51 = vadd.f32 %v80_v50, %v70_v49 }
 0xead   :  { %v1678_v39 = vadd.f32 %v1536_v60, %v89_v36  ;;  %v1685_v53 = vadd.f32 %v1539_v61, %v88_v51 }
 0xeaf   :  { %v625_v13 = vrot.slane %v1685_v53, 2  ;;  %v626_v14 = vrot.slane %v1678_v39, 2  ;;  %v682_v36 = vrot.slane %v1685_v53, 4 }
 0xee2   :  { %v566_v26 = vpop.permute.xlu1 %565 }
 0xee3   :  { %v568_v27 = vmul.f32 %v566_v26, %v551_v25 }
 0xee5   :  { %v569_v28 = vpack.c.bf16 %v568_v27, %v568_v27 }
 0xee7   :  { %1180 = vmatmul.msk.bf16.vlgmr.msrb.gmra.mxu2 %vm176_vm2, %v569_v28  ;;  %1181 = vmatmul.msk.bf16.vlgmr.msrb.gmra.mxu3 %vm176_vm2, %v569_v28 }
 0xee8   :  { %816 = vmatpush.bf16.msrb.mxu3 %v1444_v34  ;;  %803 = vmatpush.bf16.msrb.mxu2 %v1433_v30 }
 0xeec   :  { %817 = vmatpush.bf16.msrb.mxu3 %v1457_v38  ;;  %804 = vmatpush.bf16.msrb.mxu2 %v1453_v37 }
 0xef0   :  { %818 = vmatpush.bf16.msrb.mxu3 %v1477_v44  ;;  %805 = vmatpush.bf16.msrb.mxu2 %v1473_v43 }
 0xef4   :  { %819 = vmatpush.bf16.msrb.mxu3 %v1502_v54  ;;  %806 = vmatpush.bf16.msrb.mxu2 %v1497_v52 }
 0xf6a   :  { %v582_v40 = vpop.f32.mrf.mxu2  ;;  %v595_v41 = vpop.f32.mrf.mxu3 }
 0xf6b   :  { %v596_v42 = vadd.f32 %v595_v41, %v1678_v39  ;;  %v583_v55 = vadd.f32 %v582_v40, %v1685_v53  ;;  %v683_v40 = vrot.slane %v1678_v39, 4 }
 0xf6d   :  { %1277 = vtanh.f32 %v596_v42 }
 0xf6e   :  { %1279 = vtanh.f32 %v583_v55 }
 0xf72   :  { %v584_v45 = vpop.f32.mrf.mxu2  ;;  %v597_v46 = vpop.f32.mrf.mxu3 }
 0xf73   :  { %v1278_v48 = vpop.eup %1277 }
 0xf74   :  { %607 = vrot.lane.b32.xlu1 %v1278_v48, %s1358_s16  ;;  %v1280_v56 = vpop.eup %1279  ;;  %v603_v4 = vmul.f32 0.5, %v1278_v48 }
 0xf75   :  { %v601_v57 = vmul.f32 0.5, %v1280_v56 }
 0xf76   :  { %v604_v8 = vadd.f32 0.5, %v603_v4 }
 0xf77   :  { %v602_v58 = vadd.f32 0.5, %v601_v57 }
 0xf79   :  { %v605_v1 = vmul.f32 %v602_v58, %v562_v19 }
 0xfe6   :  { %v608_v59 = vpop.permute.xlu1 %607 }
 0xfe7   :  { %v610_v0 = vmul.f32 %v608_v59, %v602_v58 }
 0xfe9   :  { %612 = vrot.lane.b32.xlu1 %v610_v0, %s1358_s16 }
0x105b   :  { %v613_v2 = vpop.permute.xlu1 %612 }
0x105c   :  { %v615_v3 = vadd.f32 %v613_v2, %v605_v1 }
0x105e   :  { %1281 = vtanh.f32 %v615_v3 }
0x1064   :  { %v1282_v7 = vpop.eup %1281 }
0x1065   :  { %618 = vrot.lane.b32.xlu1 %v1282_v7, %s1358_s16 }
0x10d7   :  { %v619_v9 = vpop.permute.xlu1 %618 }
0x10d8   :  { %v621_v10 = vmul.f32 %v619_v9, %v604_v8 }
0x10da   :  { %v622_v12 = vpack.c.bf16 %v621_v10, %v621_v10  ;;  %v739_v10 = vrot.slane %v1685_v53, 6 }
0x10dc   :  { %1182 = vmatmul.msk.bf16.vlgmr.msra.gmra.mxu0 %vm176_vm2, %v622_v12  ;;  %1183 = vmatmul.msk.bf16.vlgmr.msra.gmra.mxu1 %vm176_vm2, %v622_v12  ;;  %v740_v12 = vrot.slane %v1678_v39, 6 }
0x10dd   :  { %875 = vmatpush.bf16.msra.mxu1 %v1444_v34  ;;  %862 = vmatpush.bf16.msra.mxu0 %v1433_v30 }
0x10e1   :  { %876 = vmatpush.bf16.msra.mxu1 %v1457_v38  ;;  %863 = vmatpush.bf16.msra.mxu0 %v1453_v37 }
0x10e5   :  { %877 = vmatpush.bf16.msra.mxu1 %v1477_v44  ;;  %864 = vmatpush.bf16.msra.mxu0 %v1473_v43 }
0x10e9   :  { %878 = vmatpush.bf16.msra.mxu1 %v1502_v54  ;;  %865 = vmatpush.bf16.msra.mxu0 %v1497_v52 }
0x1159   :  { %v641_v62 = vpop.f32.mrf.mxu0  ;;  %v654_v63 = vpop.f32.mrf.mxu1 }
0x115a   :  { %v642_v11 = vadd.f32 %v641_v62, %v625_v13  ;;  %v655_v17 = vadd.f32 %v654_v63, %v626_v14 }
0x115c   :  { %1283 = vtanh.f32 %v655_v17 }
0x115d   :  { %1285 = vtanh.f32 %v642_v11 }
0x1161   :  { %v643_v18 = vpop.f32.mrf.mxu0  ;;  %v656_v47 = vpop.f32.mrf.mxu1 }
0x1162   :  { %v1284_v32 = vpop.eup %1283 }
0x1163   :  { %666 = vrot.lane.b32.xlu1 %v1284_v32, %s1358_s16  ;;  %v1286_v19 = vpop.eup %1285  ;;  %v662_v28 = vmul.f32 0.5, %v1284_v32 }
0x1164   :  { %v660_v20 = vmul.f32 0.5, %v1286_v19 }
0x1165   :  { %v663_v29 = vadd.f32 0.5, %v662_v28 }
0x1166   :  { %v661_v21 = vadd.f32 0.5, %v660_v20 }
0x1168   :  { %v664_v24 = vmul.f32 %v661_v21, %v615_v3 }
0x11d5   :  { %v667_v22 = vpop.permute.xlu1 %666 }
0x11d6   :  { %v669_v23 = vmul.f32 %v667_v22, %v661_v21 }
0x11d8   :  { %671 = vrot.lane.b32.xlu1 %v669_v23, %s1358_s16 }
0x124a   :  { %v672_v25 = vpop.permute.xlu1 %671 }
0x124b   :  { %v674_v26 = vadd.f32 %v672_v25, %v664_v24  ;;  %v19_v24 = vld [vmem:[%s1824_s0 + $0x18] sm:$0xff] }
0x124c   :  { %v30_v25 = vsel %vm20_vm0, %v19_v24, -inf }
0x124d   :  { %1287 = vtanh.f32 %v674_v26 }
0x1253   :  { %v1288_v27 = vpop.eup %1287 }
0x1254   :  { %677 = vrot.lane.b32.xlu0 %v1288_v27, %s1358_s16 }
0x12c6   :  { %v678_v31 = vpop.permute.xlu0 %677 }
0x12c7   :  { %v680_v33 = vmul.f32 %v678_v31, %v663_v29 }
0x12c9   :  { %v681_v35 = vpack.c.bf16 %v680_v33, %v680_v33 }
0x12cb   :  { %1184 = vmatmul.msk.bf16.vlgmr.msra.gmra.mxu2 %vm176_vm2, %v681_v35  ;;  %1185 = vmatmul.msk.bf16.vlgmr.msra.gmra.mxu3 %vm176_vm2, %v681_v35 }
0x12cc   :  { %932 = vmatpush.bf16.msra.mxu3 %v1444_v34  ;;  %919 = vmatpush.bf16.msra.mxu2 %v1433_v30 }
0x12d0   :  { %933 = vmatpush.bf16.msra.mxu3 %v1457_v38  ;;  %920 = vmatpush.bf16.msra.mxu2 %v1453_v37 }
0x12d4   :  { %934 = vmatpush.bf16.msra.mxu3 %v1477_v44  ;;  %921 = vmatpush.bf16.msra.mxu2 %v1473_v43 }
0x12d8   :  { %935 = vmatpush.bf16.msra.mxu3 %v1502_v54  ;;  %922 = vmatpush.bf16.msra.mxu2 %v1497_v52 }
0x134e   :  { %v698_v41 = vpop.f32.mrf.mxu2  ;;  %v711_v42 = vpop.f32.mrf.mxu3 }
0x134f   :  { %v699_v45 = vadd.f32 %v698_v41, %v682_v36  ;;  %v712_v46 = vadd.f32 %v711_v42, %v683_v40 }
0x1351   :  { %1289 = vtanh.f32 %v712_v46 }
0x1352   :  { %1291 = vtanh.f32 %v699_v45 }
0x1356   :  { %v700_v48 = vpop.f32.mrf.mxu2  ;;  %v713_v49 = vpop.f32.mrf.mxu3 }
0x1357   :  { %v1290_v50 = vpop.eup %1289 }
0x1358   :  { %723 = vrot.lane.b32.xlu2 %v1290_v50, %s1358_s16  ;;  %v1292_v51 = vpop.eup %1291  ;;  %v719_v3 = vmul.f32 0.5, %v1290_v50 }
0x1359   :  { %v717_v55 = vmul.f32 0.5, %v1292_v51 }
0x135a   :  { %v720_v7 = vadd.f32 0.5, %v719_v3 }
0x135b   :  { %v718_v56 = vadd.f32 0.5, %v717_v55 }
0x135d   :  { %v721_v59 = vmul.f32 %v718_v56, %v674_v26  ;;  %v43_v26 = vsel %vm33_vm1, %v19_v24, -inf }
0x1381   :  { %31 = vmax.xlane.f32.xlu2 %v30_v25 }
0x13b2   :  { %v724_v57 = vpop.permute.xlu2 %723 }
0x13b3   :  { %v726_v58 = vmul.f32 %v724_v57, %v718_v56 }
0x13b5   :  { %728 = vrot.lane.b32.xlu1 %v726_v58, %s1358_s16 }
0x13f4   :  { %v32_v35 = vpop.xlane.xlu2 %31 }
0x13f5   :  { %v73_v40 = vmul.f32 %v1391_v5, %v32_v35 }
0x1427   :  { %v729_v0 = vpop.permute.xlu1 %728 }
0x1428   :  { %v731_v1 = vadd.f32 %v729_v0, %v721_v59 }
0x142a   :  { %1293 = vtanh.f32 %v731_v1 }
0x1430   :  { %v1294_v2 = vpop.eup %1293 }
0x1431   :  { %734 = vrot.lane.b32.xlu1 %v1294_v2, %s1358_s16 }
0x14a3   :  { %v735_v4 = vpop.permute.xlu1 %734 }
0x14a4   :  { %v737_v8 = vmul.f32 %v735_v4, %v720_v7 }
0x14a6   :  { %v738_v9 = vpack.c.bf16 %v737_v8, %v737_v8 }
0x14a8   :  { %1186 = vmatmul.msk.bf16.vlgmr.msrb.gmra.mxu0 %vm176_vm2, %v738_v9  ;;  %1187 = vmatmul.msk.bf16.vlgmr.msrb.gmra.mxu1 %vm176_vm2, %v738_v9 }
0x14a9   :  { %989 = vmatpush.bf16.msrb.mxu1 %v1444_v34  ;;  %976 = vmatpush.bf16.msrb.mxu0 %v1433_v30 }
0x14ad   :  { %990 = vmatpush.bf16.msrb.mxu1 %v1457_v38  ;;  %977 = vmatpush.bf16.msrb.mxu0 %v1453_v37 }
0x14b1   :  { %991 = vmatpush.bf16.msrb.mxu1 %v1477_v44  ;;  %978 = vmatpush.bf16.msrb.mxu0 %v1473_v43 }
0x14b5   :  { %992 = vmatpush.bf16.msrb.mxu1 %v1502_v54  ;;  %979 = vmatpush.bf16.msrb.mxu0 %v1497_v52 }
0x1525   :  { %v755_v13 = vpop.f32.mrf.mxu0  ;;  %v768_v14 = vpop.f32.mrf.mxu1 }
0x1526   :  { %v756_v62 = vadd.f32 %v755_v13, %v739_v10  ;;  %v769_v63 = vadd.f32 %v768_v14, %v740_v12 }
0x1528   :  { %1295 = vtanh.f32 %v769_v63 }
0x1529   :  { %1297 = vtanh.f32 %v756_v62 }
0x152d   :  { %v757_v11 = vpop.f32.mrf.mxu0  ;;  %v770_v17 = vpop.f32.mrf.mxu1 }
0x152e   :  { %v1296_v18 = vpop.eup %1295 }
0x152f   :  { %780 = vrot.lane.b32.xlu0 %v1296_v18, %s1358_s16  ;;  %v1298_v47 = vpop.eup %1297  ;;  %v776_v27 = vmul.f32 0.5, %v1296_v18 }
0x1530   :  { %v774_v32 = vmul.f32 0.5, %v1298_v47 }
0x1531   :  { %v777_v28 = vadd.f32 0.5, %v776_v27 }
0x1532   :  { %v775_v19 = vadd.f32 0.5, %v774_v32 }
0x1534   :  { %v778_v53 = vmul.f32 %v775_v19, %v731_v1 }
0x15a1   :  { %v781_v20 = vpop.permute.xlu0 %780 }
0x15a2   :  { %v783_v21 = vmul.f32 %v781_v20, %v775_v19 }
0x15a4   :  { %785 = vrot.lane.b32.xlu1 %v783_v21, %s1358_s16 }
0x15ce   :  { %44 = vmax.xlane.f32.xlu1 %v43_v26 }
0x1616   :  { %v786_v39 = vpop.permute.xlu1 %785 }
0x1617   :  { %v788_v22 = vadd.f32 %v786_v39, %v778_v53 }
0x1619   :  { %1299 = vtanh.f32 %v788_v22 }
0x161f   :  { %v1300_v23 = vpop.eup %1299 }
0x1620   :  { %791 = vrot.lane.b32.xlu0 %v1300_v23, %s1358_s16 }
0x1641   :  { %v45_v36 = vpop.xlane.xlu1 %44 }
0x1642   :  { %v82_v5 = vmul.f32 %v1412_v15, %v45_v36 }
0x1692   :  { %v792_v29 = vpop.permute.xlu0 %791 }
0x1693   :  { %v794_v31 = vmul.f32 %v792_v29, %v777_v28 }
0x1695   :  { %v795_v33 = vpack.c.bf16 %v794_v31, %v794_v31 }
0x1697   :  { %1188 = vmatmul.msk.bf16.vlgmr.msrb.gmra.mxu2 %vm176_vm2, %v795_v33  ;;  %1189 = vmatmul.msk.bf16.vlgmr.msrb.gmra.mxu3 %vm176_vm2, %v795_v33 }
0x1698   :  { %1042 = vmatpush.bf16.msrb.mxu3 %v1444_v34  ;;  %1029 = vmatpush.bf16.msrb.mxu2 %v1433_v30  ;;  %v83_v34 = vmul.f32 %v1394_v6, %v45_v36 }
0x169a   :  { %v91_v41 = vadd.f32 %v83_v34, %v73_v40 }
0x169c   :  { %1043 = vmatpush.bf16.msrb.mxu3 %v1457_v38  ;;  %1030 = vmatpush.bf16.msrb.mxu2 %v1453_v37  ;;  %v1753_v30 = vadd.f32 %v1536_v60, %v91_v41 }
0x169e   :  { %v852_v7 = vrot.slane %v1753_v30, 2  ;;  %v909_v25 = vrot.slane %v1753_v30, 4 }
0x16a0   :  { %1044 = vmatpush.bf16.msrb.mxu3 %v1477_v44  ;;  %1031 = vmatpush.bf16.msrb.mxu2 %v1473_v43 }
0x16a4   :  { %1045 = vmatpush.bf16.msrb.mxu3 %v1502_v54  ;;  %1032 = vmatpush.bf16.msrb.mxu2 %v1497_v52  ;;  %v72_v52 = vmul.f32 %v1415_v16, %v32_v35 }
0x16a6   :  { %v90_v45 = vadd.f32 %v82_v5, %v72_v52 }
0x16a8   :  { %v1760_v6 = vadd.f32 %v1539_v61, %v90_v45 }
0x16aa   :  { %v851_v3 = vrot.slane %v1760_v6, 2  ;;  %v908_v24 = vrot.slane %v1760_v6, 4 }
0x171a   :  { %v808_v38 = vpop.f32.mrf.mxu2  ;;  %v821_v37 = vpop.f32.mrf.mxu3 }
0x171b   :  { %v822_v44 = vadd.f32 %v821_v37, %v1753_v30  ;;  %v809_v46 = vadd.f32 %v808_v38, %v1760_v6 }
0x171d   :  { %1301 = vtanh.f32 %v822_v44 }
0x171e   :  { %1303 = vtanh.f32 %v809_v46 }
0x1722   :  { %v810_v43 = vpop.f32.mrf.mxu2  ;;  %v823_v42 = vpop.f32.mrf.mxu3 }
0x1723   :  { %v1302_v54 = vpop.eup %1301 }
0x1724   :  { %833 = vrot.lane.b32.xlu0 %v1302_v54, %s1358_s16  ;;  %v1304_v48 = vpop.eup %1303  ;;  %v829_v15 = vmul.f32 0.5, %v1302_v54 }
0x1725   :  { %v827_v49 = vmul.f32 0.5, %v1304_v48  ;;  %v965_v48 = vrot.slane %v1760_v6, 6 }
0x1726   :  { %v830_v59 = vadd.f32 0.5, %v829_v15 }
0x1727   :  { %v828_v50 = vadd.f32 0.5, %v827_v49  ;;  %v966_v49 = vrot.slane %v1753_v30, 6 }
0x1729   :  { %v831_v56 = vmul.f32 %v828_v50, %v788_v22 }
0x1796   :  { %v834_v51 = vpop.permute.xlu0 %833 }
0x1797   :  { %v836_v55 = vmul.f32 %v834_v51, %v828_v50 }
0x1799   :  { %838 = vrot.lane.b32.xlu0 %v836_v55, %s1358_s16 }
0x180b   :  { %v839_v57 = vpop.permute.xlu0 %838 }
0x180c   :  { %v841_v58 = vadd.f32 %v839_v57, %v831_v56 }
0x180e   :  { %1305 = vtanh.f32 %v841_v58 }
0x1814   :  { %v1306_v16 = vpop.eup %1305 }
0x1815   :  { %844 = vrot.lane.b32.xlu0 %v1306_v16, %s1358_s16 }
0x1887   :  { %v845_v0 = vpop.permute.xlu0 %844 }
0x1888   :  { %v847_v1 = vmul.f32 %v845_v0, %v830_v59 }
0x188a   :  { %v848_v2 = vpack.c.bf16 %v847_v1, %v847_v1 }
0x188c   :  { %1190 = vmatmul.msk.bf16.vlgmr.msra.gmra.mxu0 %vm176_vm2, %v848_v2  ;;  %1191 = vmatmul.msk.bf16.vlgmr.msra.gmra.mxu1 %vm176_vm2, %v848_v2 }
0x1909   :  { %v867_v4 = vpop.f32.mrf.mxu0  ;;  %v880_v8 = vpop.f32.mrf.mxu1 }
0x190a   :  { %v868_v9 = vadd.f32 %v867_v4, %v851_v3  ;;  %v881_v10 = vadd.f32 %v880_v8, %v852_v7 }
0x190c   :  { %1307 = vtanh.f32 %v881_v10 }
0x190d   :  { %1309 = vtanh.f32 %v868_v9 }
0x1911   :  { %v869_v12 = vpop.f32.mrf.mxu0  ;;  %v882_v13 = vpop.f32.mrf.mxu1 }
0x1912   :  { %v1308_v14 = vpop.eup %1307 }
0x1913   :  { %892 = vrot.lane.b32.xlu0 %v1308_v14, %s1358_s16  ;;  %v1310_v62 = vpop.eup %1309  ;;  %v888_v21 = vmul.f32 0.5, %v1308_v14 }
0x1914   :  { %v886_v63 = vmul.f32 0.5, %v1310_v62 }
0x1915   :  { %v889_v53 = vadd.f32 0.5, %v888_v21 }
0x1916   :  { %v887_v11 = vadd.f32 0.5, %v886_v63 }
0x1918   :  { %v890_v47 = vmul.f32 %v887_v11, %v841_v58 }
0x1985   :  { %v893_v17 = vpop.permute.xlu0 %892 }
0x1986   :  { %v895_v18 = vmul.f32 %v893_v17, %v887_v11 }
0x1988   :  { %897 = vrot.lane.b32.xlu0 %v895_v18, %s1358_s16 }
0x19fa   :  { %v898_v32 = vpop.permute.xlu0 %897 }
0x19fb   :  { %v900_v19 = vadd.f32 %v898_v32, %v890_v47 }
0x19fd   :  { %1311 = vtanh.f32 %v900_v19 }
0x1a03   :  { %v1312_v20 = vpop.eup %1311 }
0x1a04   :  { %903 = vrot.lane.b32.xlu2 %v1312_v20, %s1358_s16 }
0x1a5e   :  { %v904_v39 = vpop.permute.xlu2 %903 }
0x1a5f   :  { %v906_v22 = vmul.f32 %v904_v39, %v889_v53  ;;  %v1226_v53 = vld [vmem:[%s1825_s1 + $0x58] sm:$0xf0] }
0x1a61   :  { %v907_v23 = vpack.c.bf16 %v906_v22, %v906_v22  ;;  %v1223_v22 = vld [vmem:[%s1825_s1 + $0x40] sm:$0xf0] }
0x1a63   :  { %1192 = vmatmul.msk.bf16.vlgmr.msra.gmra.mxu2 %vm176_vm2, %v907_v23  ;;  %1193 = vmatmul.msk.bf16.vlgmr.msra.gmra.mxu3 %vm176_vm2, %v907_v23 }
0x1ae6   :  { %v924_v26 = vpop.f32.mrf.mxu2  ;;  %v937_v27 = vpop.f32.mrf.mxu3 }
0x1ae7   :  { %v925_v28 = vadd.f32 %v924_v26, %v908_v24  ;;  %v938_v29 = vadd.f32 %v937_v27, %v909_v25  ;;  %v1204_v24 = vld [vmem:[%s1825_s1 + $0x20] sm:$0xf]  ;;  %v1220_v25 = vld [vmem:[%s1825_s1 + $0x28] sm:$0xf0] }
0x1ae8   :  { %v1205_v26 = vor.u32 %v1220_v25, %v1204_v24 }
0x1ae9   :  { %1313 = vtanh.f32 %v938_v29 }
0x1aea   :  { %1315 = vtanh.f32 %v925_v28 }
0x1aee   :  { %v926_v31 = vpop.f32.mrf.mxu2  ;;  %v939_v33 = vpop.f32.mrf.mxu3 }
0x1aef   :  { %v1314_v35 = vpop.eup %1313  ;;  %v1200_v33 = vld [vmem:[%s1825_s1 + $0x8] sm:$0xf] }
0x1af0   :  { %949 = vrot.lane.b32.xlu1 %v1314_v35, %s1358_s16  ;;  %v1316_v36 = vpop.eup %1315  ;;  %v945_v54 = vmul.f32 0.5, %v1314_v35  ;;  %v1217_v35 = vld [vmem:[%s1825_s1 + $0x10] sm:$0xf0] }
0x1af1   :  { %v943_v40 = vmul.f32 0.5, %v1316_v36  ;;  %v1201_v36 = vor.u32 %v1217_v35, %v1200_v33 }
0x1af2   :  { %v946_v52 = vadd.f32 0.5, %v945_v54 }
0x1af3   :  { %v944_v34 = vadd.f32 0.5, %v943_v40 }
0x1af5   :  { %v947_v37 = vmul.f32 %v944_v34, %v900_v19 }
0x1b62   :  { %v950_v41 = vpop.permute.xlu1 %949 }
0x1b63   :  { %v952_v38 = vmul.f32 %v950_v41, %v944_v34 }
0x1b65   :  { %954 = vrot.lane.b32.xlu0 %v952_v38, %s1358_s16 }
0x1bd7   :  { %v955_v44 = vpop.permute.xlu0 %954 }
0x1bd8   :  { %v957_v43 = vadd.f32 %v955_v44, %v947_v37  ;;  %v1331_v44 = vld [vmem:[%s1826_s2] sm:$0x1f] }
0x1bda   :  { %1317 = vtanh.f32 %v957_v43 }
0x1be0   :  { %v1318_v42 = vpop.eup %1317 }
0x1be1   :  { %960 = vrot.lane.b32.xlu0 %v1318_v42, %s1358_s16 }
0x1c53   :  { %v961_v5 = vpop.permute.xlu0 %960 }
0x1c54   :  { %v963_v45 = vmul.f32 %v961_v5, %v946_v52 }
0x1c56   :  { %v964_v46 = vpack.c.bf16 %v963_v45, %v963_v45 }
0x1c58   :  { %1194 = vmatmul.msk.bf16.vlgmr.msrb.gmra.mxu0 %vm176_vm2, %v964_v46  ;;  %1195 = vmatmul.msk.bf16.vlgmr.msrb.gmra.mxu1 %vm176_vm2, %v964_v46 }
0x1cd5   :  { %v981_v50 = vpop.f32.mrf.mxu0  ;;  %v994_v51 = vpop.f32.mrf.mxu1 }
0x1cd6   :  { %v982_v55 = vadd.f32 %v981_v50, %v965_v48  ;;  %v995_v56 = vadd.f32 %v994_v51, %v966_v49 }
0x1cd8   :  { %1319 = vtanh.f32 %v995_v56 }
0x1cd9   :  { %1321 = vtanh.f32 %v982_v55 }
0x1cdd   :  { %v983_v57 = vpop.f32.mrf.mxu0  ;;  %v996_v58 = vpop.f32.mrf.mxu1 }
0x1cde   :  { %v1320_v16 = vpop.eup %1319 }
0x1cdf   :  { %1006 = vrot.lane.b32.xlu0 %v1320_v16, %s1358_s16  ;;  %v1322_v15 = vpop.eup %1321  ;;  %v1002_v4 = vmul.f32 0.5, %v1320_v16 }
0x1ce0   :  { %v1000_v59 = vmul.f32 0.5, %v1322_v15 }
0x1ce1   :  { %v1003_v8 = vadd.f32 0.5, %v1002_v4 }
0x1ce2   :  { %v1001_v0 = vadd.f32 0.5, %v1000_v59 }
0x1ce4   :  { %v1004_v6 = vmul.f32 %v1001_v0, %v957_v43  ;;  %v1075_v43 = vperm.slane %v1331_v44, 4 }
0x1d51   :  { %v1007_v1 = vpop.permute.xlu0 %1006 }
0x1d52   :  { %v1009_v2 = vmul.f32 %v1007_v1, %v1001_v0 }
0x1d54   :  { %1011 = vrot.lane.b32.xlu2 %v1009_v2, %s1358_s16 }
0x1dae   :  { %v1012_v30 = vpop.permute.xlu2 %1011 }
0x1daf   :  { %v1014_v3 = vadd.f32 %v1012_v30, %v1004_v6 }
0x1db1   :  { %1323 = vtanh.f32 %v1014_v3 }
0x1db7   :  { %v1324_v7 = vpop.eup %1323 }
0x1db8   :  { %1017 = vrot.lane.b32.xlu1 %v1324_v7, %s1358_s16 }
0x1e2a   :  { %v1018_v9 = vpop.permute.xlu1 %1017 }
0x1e2b   :  { %v1020_v10 = vmul.f32 %v1018_v9, %v1003_v8 }
0x1e2d   :  { %v1021_v12 = vpack.c.bf16 %v1020_v10, %v1020_v10 }
0x1e2f   :  { %1196 = vmatmul.msk.bf16.vlgmr.msrb.gmra.mxu2 %vm176_vm2, %v1021_v12  ;;  %1197 = vmatmul.msk.bf16.vlgmr.msrb.gmra.mxu3 %vm176_vm2, %v1021_v12 }
0x1eb2   :  { %v1034_v13 = vpop.f32.mrf.mxu2  ;;  %v1047_v14 = vpop.f32.mrf.mxu3 }
0x1eb3   :  { %v1048_v62 = vadd.f32 %v1047_v14, %v1536_v60  ;;  %v1035_v18 = vadd.f32 %v1034_v13, %v1539_v61  ;;  %v1212_v60 = vld [vmem:[%s1825_s1 + $0x50] sm:$0xf]  ;;  %v1208_v61 = vld [vmem:[%s1825_s1 + $0x38] sm:$0xf]  ;;  %s1125_s1 = sshll.u32 %s1827_s3, 4  ;;  %s1126_s1 = int_to_ptr.hbm [resolvable:$true] %s1125_s1 }
0x1eb4   :  { %v1213_v39 = vor.u32 %v1226_v53, %v1212_v60  ;;  %v1209_v23 = vor.u32 %v1223_v22, %v1208_v61 }
0x1eb5   :  { %1325 = vtanh.f32 %v1048_v62 }
0x1eb6   :  { %1327 = vtanh.f32 %v1035_v18  ;;  %1107 = vmatpush.bf16.msra.mxu0 %v1213_v39 }
0x1eba   :  { %v1036_v63 = vpop.f32.mrf.mxu2  ;;  %v1049_v11 = vpop.f32.mrf.mxu3  ;;  %1108 = vmatpush.bf16.msra.mxu0 %v1209_v23 }
0x1ebb   :  { %v1326_v17 = vpop.eup %1325 }
0x1ebc   :  { %1059 = vrot.lane.b32.xlu0 %v1326_v17, %s1358_s16  ;;  %v1328_v47 = vpop.eup %1327  ;;  %v1055_v40 = vmul.f32 0.5, %v1326_v17 }
0x1ebd   :  { %v1053_v32 = vmul.f32 0.5, %v1328_v47 }
0x1ebe   :  { %1109 = vmatpush.bf16.msra.mxu0 %v1205_v26  ;;  %v1056_v34 = vadd.f32 0.5, %v1055_v40 }
0x1ebf   :  { %v1054_v19 = vadd.f32 0.5, %v1053_v32 }
0x1ec1   :  { %v1057_v27 = vmul.f32 %v1054_v19, %v1014_v3 }
0x1ec2   :  { %1110 = vmatpush.bf16.msra.mxu0 %v1201_v36 }
0x1f2e   :  { %v1060_v20 = vpop.permute.xlu0 %1059 }
0x1f2f   :  { %v1062_v21 = vmul.f32 %v1060_v20, %v1054_v19 }
0x1f31   :  { %1064 = vrot.lane.b32.xlu2 %v1062_v21, %s1358_s16 }
0x1f8b   :  { %v1065_v28 = vpop.permute.xlu2 %1064 }
0x1f8c   :  { %v1067_v29 = vadd.f32 %v1065_v28, %v1057_v27 }
0x1f8e   :  { %1329 = vtanh.f32 %v1067_v29 }
0x1f94   :  { %v1330_v31 = vpop.eup %1329 }
0x1f95   :  { %1070 = vrot.lane.b32.xlu1 %v1330_v31, %s1358_s16  ;;  %s1359_s16 = smov [#allocation2]  }
0x1f96   :  { %s1123_s22 = sshll.u32 %s1359_s16, 4  ;;  %s1124_s22 = int_to_ptr.vmem [resolvable:$true] %s1123_s22 }
0x2007   :  { %v1071_v41 = vpop.permute.xlu1 %1070 }
0x2008   :  { %v1073_v38 = vmul.f32 %v1071_v41, %v1056_v34 }
0x200a   :  { %v1074_v37 = vpack.c.bf16 %v1073_v38, %v1073_v38 }
0x200c   :  { %1214 = vmatmul.msk.bf16.vlgmr.msra.gmra.mxu0 %vm176_vm2, %v1074_v37 }
0x2089   :  { %v1112_v42 = vpop.f32.mrf.mxu0 }
0x208a   :  { %v1113_v54 = vadd.f32 %v1112_v42, %v1075_v43 }
0x208c   :  { %1117 = vst.msk [vmem:[#allocation2] sm:$0x3] %vm1116_vm3, %v1113_v54 }
0x208d   :  { %1128 = dma.vmem_to_hbm [thread:$0]  %s1124_s22, 32, %s1126_s1, [#allocation3]  }
0x2091   :  { %v1114_v52 = vpop.f32.mrf.mxu0 }
0x2092   :  { %1356 = dma.done.wait [#allocation3], 32  }
0x2093   :  { %1357 = vsyncadd [#allocation3], 4294967264 }
0x2094   :  { %1133 = vsyncpa [#allocation3], 1 }

</bundles_post_ra>
